<compile_context>
chip_gen: v7x
topology: tpu7x:2x2x1
jax: 0.10.0
libtpu: 0.0.40
codegen_flags: <defaults>
</compile_context>

<pallas_src>
import functools

import jax
import jax.numpy as jnp
from jax.experimental import pallas as pl
from jax.experimental.pallas import tpu as pltpu

KERNEL_SIZE = 7
POOL = 3                                    # MaxPool2d(kernel=(1,3), stride=(1,3))
LAYER_CFG = [8, 'm', 16, 'm', 32, 'm', 64, 'm']   # '4l008'
N_OUTPUT = 5
IN_CHANNELS = 1
BN_EPS = 1e-5

LANES = 128          # f32 vreg lane width (slab is packed to this width)
CF_MAX_COUT = 16     # stages with Cout <= 16 run channels-first (width on lanes)


def _mish(y):
    # mish(y) = y * tanh(softplus(y)) = y * ((1+e^y)^2 - 1) / ((1+e^y)^2 + 1)
    # -> one exp + one reciprocal instead of exp + log + tanh (EUP is 1-slot).
    e = jnp.exp(jnp.minimum(y, 20.0))
    n2 = (1.0 + e) * (1.0 + e)
    t = (n2 - 1.0) * pl.reciprocal(n2 + 1.0, approx=False)
    return jnp.where(y > 20.0, y, y * t)


def _isonet_kernel(*refs, stages, cls_off, cls_cin, n_out, n_extra, k_size):
    """Whole ISONet forward for one batch row; everything stays in vregs/VMEM.

    refs: x (1, Cin, W0) | slab (R, 128) | extra pool-select mats | out (1,1,n_out)
    """
    x_ref = refs[0]
    slab = refs[1]
    extra = refs[2:2 + n_extra]
    o_ref = refs[2 + n_extra]

    a = x_ref[0]                       # (Cin, W0) channels-first, width on lanes
    transposed = False
    for st in stages:
        cin, cout = st['cin'], st['cout']
        wc, wp = st['wc'], st['wp']
        w_off, sb_off = st['w_off'], st['sb_off']

        if st['cf']:
            # ---- channels-first (C, W): width on the 128-lane axis ----
            if cin == 1:
                # Cin == 1: 7 lane-shifted broadcast FMAs on the VPU, skip MXU.
                w1 = slab[w_off:w_off + cout, 0:k_size]            # (Cout, K)
                acc = a[:, 0:wc] * w1[:, 0:1]
                for k in range(1, k_size):
                    acc = acc + a[:, k:k + wc] * w1[:, k:k + 1]
            else:
                # im2col via sublane concat -> single matmul, contraction K*Cin.
                acol = jnp.concatenate(
                    [a[:, k:k + wc] for k in range(k_size)], axis=0)  # (K*Cin, Wc)
                wmat = slab[w_off:w_off + cout, 0:k_size * cin]       # (Cout, K*Cin)
                acc = jnp.dot(wmat, acol, preferred_element_type=jnp.float32)

            scale = slab[sb_off:sb_off + cout, 0:1]                   # (Cout, 1)
            bias = slab[sb_off:sb_off + cout, 1:2]
            y = _mish(scale * acc + bias)                             # (Cout, Wc)

            # MaxPool(1,3)/s3 along lanes: max of 3 shifted copies, then a
            # stride-3 downsample as a 0/1 select matmul (exact, MXU is idle).
            m = jnp.maximum(jnp.maximum(y[:, 0:wc - 2], y[:, 1:wc - 1]),
                            y[:, 2:wc])                               # (Cout, Wc-2)
            if st['pool_extra'] is not None:
                sel = extra[st['pool_extra']][...]                    # (Wc-2, Wp)
            else:
                sel = slab[st['pool_off']:st['pool_off'] + (wc - 2), 0:wp]
            a = jnp.dot(m, sel, preferred_element_type=jnp.float32)   # (Cout, Wp)
        else:
            # ---- (W, C): channels on lanes, used once C >= 32 ----
            if not transposed:
                a = jnp.transpose(a)        # (C, W) -> (W, C), done exactly once
                transposed = True

            acc = jnp.dot(a[0:wc, :], slab[w_off:w_off + cin, 0:cout],
                          preferred_element_type=jnp.float32)
            for k in range(1, k_size):
                acc = acc + jnp.dot(
                    a[k:k + wc, :],
                    slab[w_off + k * cin:w_off + (k + 1) * cin, 0:cout],
                    preferred_element_type=jnp.float32)               # (Wc, Cout)

            scale = slab[sb_off:sb_off + 1, 0:cout]                   # (1, Cout)
            bias = slab[sb_off + 1:sb_off + 2, 0:cout]
            y = _mish(scale * acc + bias)                             # (Wc, Cout)

            if st['last']:
                # Final MaxPool + AdaptiveMaxPool((1,1)) fused: both reduce W,
                # and the union of pool windows is exactly rows [0, 3*Wp).
                a = jnp.max(y[0:POOL * wp, :], axis=0, keepdims=True)  # (1, Cout)
            else:
                m = jnp.maximum(jnp.maximum(y[0:wc - 2, :], y[1:wc - 1, :]),
                                y[2:wc, :])                            # (Wc-2, Cout)
                if st['pool_extra'] is not None:
                    sel = extra[st['pool_extra']][...]                 # (Wp, Wc-2)
                else:
                    sel = slab[st['pool_off']:st['pool_off'] + wp, 0:wc - 2]
                a = jnp.dot(sel, m, preferred_element_type=jnp.float32)  # (Wp, Cout)

    # Bias-free linear classifier.
    wcls = slab[cls_off:cls_off + cls_cin, 0:n_out]                    # (C_last, n_out)
    o_ref[0] = jnp.dot(a, wcls, preferred_element_type=jnp.float32)    # (1, n_out)


def _pool_select(wc, wp):
    """(Wc-2, Wp) f32 0/1 matrix with S[w, j] = 1 iff w == POOL*j."""
    r = jnp.arange(wc - 2)[:, None]
    c = jnp.arange(wp)[None, :]
    return (r == POOL * c).astype(jnp.float32)


def pack_params(params, w0):
    """Pack every parameter into one (R, 128) f32 slab + a list of wide extras.

    Returns (slab, extras, stages, cls_off) where `stages` holds only static
    Python ints/bools (row offsets into the slab, shapes, layout flags).
    """
    blocks = params['blocks']
    w_cls = params['w_cls']

    segs = []
    row = 0

    def add(arr):
        nonlocal row
        arr = jnp.asarray(arr, jnp.float32)
        r, c = arr.shape
        assert c <= LANES, "slab blocks must be <= 128 lanes wide"
        rp = ((r + 7) // 8) * 8                       # 8-row (sublane) aligned
        seg = jnp.zeros((rp, LANES), jnp.float32).at[:r, :c].set(arr)
        segs.append(seg)
        off = row
        row += rp
        return off

    stages = []
    extras = []
    w_in = w0
    n_stages = len(blocks)
    for s, (w, b, scale, shift) in enumerate(blocks):
        k, cin, cout = w.shape
        wc = w_in - k + 1
        wp = (wc - POOL) // POOL + 1
        cf = cout <= CF_MAX_COUT
        last = (s == n_stages - 1)
        # Fold conv bias into the BN affine: y = scale*conv + (scale*b + shift).
        scl = scale.reshape(cout)
        bias = (scale * b + shift).reshape(cout)

        st = dict(cin=cin, cout=cout, wc=wc, wp=wp, cf=cf, last=last,
                  pool_extra=None, pool_off=None)
        if cf:
            st['w_off'] = add(w.reshape(k * cin, cout).T)        # (Cout, K*Cin)
            st['sb_off'] = add(jnp.stack([scl, bias], axis=1))   # (Cout, 2)
            sel = _pool_select(wc, wp)                           # (Wc-2, Wp)
            if wp > LANES:
                st['pool_extra'] = len(extras)
                extras.append(sel)
            else:
                st['pool_off'] = add(sel)
        else:
            st['w_off'] = add(w.reshape(k * cin, cout))          # (K*Cin, Cout)
            st['sb_off'] = add(jnp.stack([scl, bias], axis=0))   # (2, Cout)
            if not last:
                sel_t = _pool_select(wc, wp).T                   # (Wp, Wc-2)
                if wc - 2 > LANES:
                    st['pool_extra'] = len(extras)
                    extras.append(sel_t)
                else:
                    st['pool_off'] = add(sel_t)
        stages.append(st)
        w_in = wp

    cls_off = add(w_cls)                                         # (C_last, n_out)
    slab = jnp.concatenate(segs, axis=0)
    return slab, tuple(extras), stages, cls_off


def isonet_forward(x_nchw, params):
    """ISONet forward: (N, Cin, 1, L) NCHW -> logits (N, n_output)."""
    n, cin, h, l = x_nchw.shape
    assert h == 1, "ISONet is a 1-D model; expected H == 1"
    w0 = h * l
    x = x_nchw.reshape(n, cin, w0)          # channels-first, width on lanes

    slab, extras, stages, cls_off = pack_params(params, w0)
    assert not stages[-1]['cf'], "last stage must run in (W, C) layout"
    cls_cin = stages[-1]['cout']

    kern = functools.partial(
        _isonet_kernel, stages=stages, cls_off=cls_off, cls_cin=cls_cin,
        n_out=N_OUTPUT, n_extra=len(extras), k_size=KERNEL_SIZE)

    in_specs = [pl.BlockSpec((1, cin, w0), lambda i: (i, 0, 0)),
                pl.BlockSpec(slab.shape, lambda i: (0, 0))]
    in_specs += [pl.BlockSpec(e.shape, lambda i: (0, 0)) for e in extras]

    out = pl.pallas_call(
        kern,
        out_shape=jax.ShapeDtypeStruct((n, 1, N_OUTPUT), jnp.float32),
        grid=(n,),
        in_specs=in_specs,
        out_specs=pl.BlockSpec((1, 1, N_OUTPUT), lambda i: (i, 0, 0)),
        compiler_params=pltpu.CompilerParams(
            dimension_semantics=("parallel",)),
    )(x, slab, *extras)
    return out[:, 0, :]


def init_params(key):
    blocks = []
    cin = IN_CHANNELS
    channels = [c for c in LAYER_CFG if c != 'm']
    for cout in channels:
        key, k1, k2, k3, k4 = jax.random.split(key, 5)
        fan_in = cin * KERNEL_SIZE
        w = jax.random.normal(k1, (KERNEL_SIZE, cin, cout), jnp.float32) / jnp.sqrt(fan_in)
        b = 0.01 * jax.random.normal(k2, (1, cout), jnp.float32)
        gamma = 1.0 + 0.1 * jax.random.normal(k3, (cout,), jnp.float32)
        beta = 0.1 * jax.random.normal(k4, (cout,), jnp.float32)
        mean = jnp.zeros((cout,), jnp.float32)
        var = jnp.ones((cout,), jnp.float32)
        inv_std = gamma / jnp.sqrt(var + BN_EPS)
        scale = inv_std.reshape(1, cout)
        shift = (beta - mean * inv_std).reshape(1, cout)
        blocks.append((w, b, scale, shift))
        cin = cout
    key, kc = jax.random.split(key)
    w_cls = jax.random.normal(kc, (cin, N_OUTPUT), jnp.float32) / jnp.sqrt(cin)
    return {'blocks': blocks, 'w_cls': w_cls}


def reference_forward(x_nchw, params):
    """Pure-JAX (XLA) reference mirroring the PyTorch forward."""
    a = x_nchw
    for (w, b, scale, shift) in params['blocks']:
        _, _, cout = w.shape
        wt = jnp.transpose(w, (2, 1, 0))[:, :, None, :]   # (Cout, Cin, 1, K)
        a = jax.lax.conv_general_dilated(
            a, wt, window_strides=(1, 1), padding='VALID',
            dimension_numbers=('NCHW', 'OIHW', 'NCHW'))
        a = a + b.reshape(1, cout, 1, 1)
        a = scale.reshape(1, cout, 1, 1) * a + shift.reshape(1, cout, 1, 1)
        a = a * jnp.tanh(jax.nn.softplus(a))               # Mish
        a = jax.lax.reduce_window(a, -jnp.inf, jax.lax.max,
                                  (1, 1, 1, POOL), (1, 1, 1, POOL), 'VALID')
    g = jnp.max(a, axis=(2, 3))                            # AdaptiveMaxPool2d((1,1))
    return g @ params['w_cls']                             # Linear(bias=False)


if __name__ == "__main__":
    key = jax.random.PRNGKey(0)
    key, kx = jax.random.split(key)
    x = jax.random.normal(kx, (2, IN_CHANNELS, 1, 400), jnp.float32)  # NCHW, H=1
    params = init_params(key)

    out = isonet_forward(x, params)
    out = jax.block_until_ready(out)

    ref = reference_forward(x, params)
    assert out.shape == (2, N_OUTPUT)
    assert jnp.allclose(out, ref, rtol=5e-4, atol=5e-4), (out, ref)
    print("KERNEL_OK")
</pallas_src>

<mosaic_0001>
module attributes {stable_mosaic.version = 11 : i64} {
  func.func @_isonet_kernel(%arg0: i32, %arg1: memref<1x1x400xf32, #tpu.memory_space<vmem>>, %arg2: memref<608x128xf32, #tpu.memory_space<vmem>>, %arg3: memref<392x131xf32, #tpu.memory_space<vmem>>, %arg4: memref<1x1x5xf32, #tpu.memory_space<vmem>>) attributes {dimension_semantics = [#tpu.dimension_semantics<parallel>], iteration_bounds = array<i64: 2>, scalar_prefetch = 0 : i64, scratch_operands = 0 : i64, tpu.core_type = #tpu.core_type<tc>, window_params = [{transform_indices = @transform_0, window_bounds = array<i64: 1, 1, 400>}, {pipeline_mode = #tpu.pipeline_mode<synchronous>, transform_indices = @transform_1, window_bounds = array<i64: 608, 128>}, {pipeline_mode = #tpu.pipeline_mode<synchronous>, transform_indices = @transform_2, window_bounds = array<i64: 392, 131>}, {transform_indices = @transform_3, window_bounds = array<i64: 1, 1, 5>}]} {
    %c0 = arith.constant 0 : index
    %c0_0 = arith.constant 0 : index
    %c0_1 = arith.constant 0 : index
    %0 = vector.load %arg1[%c0, %c0_0, %c0_1] : memref<1x1x400xf32, #tpu.memory_space<vmem>>, vector<1x1x400xf32>
    %1 = vector.shape_cast %0 : vector<1x1x400xf32> to vector<1x400xf32>
    %c0_2 = arith.constant 0 : index
    %c0_3 = arith.constant 0 : index
    %2 = vector.load %arg2[%c0_2, %c0_3] : memref<608x128xf32, #tpu.memory_space<vmem>>, vector<8x7xf32>
    %3 = vector.extract_strided_slice %1 {offsets = [0, 0], sizes = [1, 394], strides = [1, 1]} : vector<1x400xf32> to vector<1x394xf32>
    %4 = vector.extract_strided_slice %2 {offsets = [0, 0], sizes = [8, 1], strides = [1, 1]} : vector<8x7xf32> to vector<8x1xf32>
    %5 = vector.broadcast %3 : vector<1x394xf32> to vector<8x394xf32>
    %6 = vector.broadcast %4 : vector<8x1xf32> to vector<8x394xf32>
    %7 = arith.mulf %5, %6 : vector<8x394xf32>
    %8 = vector.extract_strided_slice %1 {offsets = [0, 1], sizes = [1, 394], strides = [1, 1]} : vector<1x400xf32> to vector<1x394xf32>
    %9 = vector.extract_strided_slice %2 {offsets = [0, 1], sizes = [8, 1], strides = [1, 1]} : vector<8x7xf32> to vector<8x1xf32>
    %10 = vector.broadcast %8 : vector<1x394xf32> to vector<8x394xf32>
    %11 = vector.broadcast %9 : vector<8x1xf32> to vector<8x394xf32>
    %12 = arith.mulf %10, %11 : vector<8x394xf32>
    %13 = arith.addf %7, %12 : vector<8x394xf32>
    %14 = vector.extract_strided_slice %1 {offsets = [0, 2], sizes = [1, 394], strides = [1, 1]} : vector<1x400xf32> to vector<1x394xf32>
    %15 = vector.extract_strided_slice %2 {offsets = [0, 2], sizes = [8, 1], strides = [1, 1]} : vector<8x7xf32> to vector<8x1xf32>
    %16 = vector.broadcast %14 : vector<1x394xf32> to vector<8x394xf32>
    %17 = vector.broadcast %15 : vector<8x1xf32> to vector<8x394xf32>
    %18 = arith.mulf %16, %17 : vector<8x394xf32>
    %19 = arith.addf %13, %18 : vector<8x394xf32>
    %20 = vector.extract_strided_slice %1 {offsets = [0, 3], sizes = [1, 394], strides = [1, 1]} : vector<1x400xf32> to vector<1x394xf32>
    %21 = vector.extract_strided_slice %2 {offsets = [0, 3], sizes = [8, 1], strides = [1, 1]} : vector<8x7xf32> to vector<8x1xf32>
    %22 = vector.broadcast %20 : vector<1x394xf32> to vector<8x394xf32>
    %23 = vector.broadcast %21 : vector<8x1xf32> to vector<8x394xf32>
    %24 = arith.mulf %22, %23 : vector<8x394xf32>
    %25 = arith.addf %19, %24 : vector<8x394xf32>
    %26 = vector.extract_strided_slice %1 {offsets = [0, 4], sizes = [1, 394], strides = [1, 1]} : vector<1x400xf32> to vector<1x394xf32>
    %27 = vector.extract_strided_slice %2 {offsets = [0, 4], sizes = [8, 1], strides = [1, 1]} : vector<8x7xf32> to vector<8x1xf32>
    %28 = vector.broadcast %26 : vector<1x394xf32> to vector<8x394xf32>
    %29 = vector.broadcast %27 : vector<8x1xf32> to vector<8x394xf32>
    %30 = arith.mulf %28, %29 : vector<8x394xf32>
    %31 = arith.addf %25, %30 : vector<8x394xf32>
    %32 = vector.extract_strided_slice %1 {offsets = [0, 5], sizes = [1, 394], strides = [1, 1]} : vector<1x400xf32> to vector<1x394xf32>
    %33 = vector.extract_strided_slice %2 {offsets = [0, 5], sizes = [8, 1], strides = [1, 1]} : vector<8x7xf32> to vector<8x1xf32>
    %34 = vector.broadcast %32 : vector<1x394xf32> to vector<8x394xf32>
    %35 = vector.broadcast %33 : vector<8x1xf32> to vector<8x394xf32>
    %36 = arith.mulf %34, %35 : vector<8x394xf32>
    %37 = arith.addf %31, %36 : vector<8x394xf32>
    %38 = vector.extract_strided_slice %1 {offsets = [0, 6], sizes = [1, 394], strides = [1, 1]} : vector<1x400xf32> to vector<1x394xf32>
    %39 = vector.extract_strided_slice %2 {offsets = [0, 6], sizes = [8, 1], strides = [1, 1]} : vector<8x7xf32> to vector<8x1xf32>
    %40 = vector.broadcast %38 : vector<1x394xf32> to vector<8x394xf32>
    %41 = vector.broadcast %39 : vector<8x1xf32> to vector<8x394xf32>
    %42 = arith.mulf %40, %41 : vector<8x394xf32>
    %43 = arith.addf %37, %42 : vector<8x394xf32>
    %c8 = arith.constant 8 : index
    %c0_4 = arith.constant 0 : index
    %44 = vector.load %arg2[%c8, %c0_4] : memref<608x128xf32, #tpu.memory_space<vmem>>, vector<8x1xf32>
    %c8_5 = arith.constant 8 : index
    %c1 = arith.constant 1 : index
    %45 = vector.load %arg2[%c8_5, %c1] : memref<608x128xf32, #tpu.memory_space<vmem>>, vector<8x1xf32>
    %46 = vector.broadcast %44 : vector<8x1xf32> to vector<8x394xf32>
    %47 = arith.mulf %46, %43 : vector<8x394xf32>
    %48 = vector.broadcast %45 : vector<8x1xf32> to vector<8x394xf32>
    %49 = arith.addf %47, %48 : vector<8x394xf32>
    %cst = arith.constant 2.000000e+01 : f32
    %50 = vector.broadcast %cst : f32 to vector<8x394xf32>
    %51 = arith.minimumf %49, %50 : vector<8x394xf32>
    %52 = math.exp %51 : vector<8x394xf32>
    %cst_6 = arith.constant 1.000000e+00 : f32
    %53 = vector.broadcast %cst_6 : f32 to vector<8x394xf32>
    %54 = arith.addf %53, %52 : vector<8x394xf32>
    %cst_7 = arith.constant 1.000000e+00 : f32
    %55 = vector.broadcast %cst_7 : f32 to vector<8x394xf32>
    %56 = arith.addf %55, %52 : vector<8x394xf32>
    %57 = arith.mulf %54, %56 : vector<8x394xf32>
    %cst_8 = arith.constant 1.000000e+00 : f32
    %58 = vector.broadcast %cst_8 : f32 to vector<8x394xf32>
    %59 = arith.subf %57, %58 : vector<8x394xf32>
    %cst_9 = arith.constant 1.000000e+00 : f32
    %60 = vector.broadcast %cst_9 : f32 to vector<8x394xf32>
    %61 = arith.addf %57, %60 : vector<8x394xf32>
    %62 = tpu.reciprocal %61 : vector<8x394xf32> -> vector<8x394xf32>
    %63 = arith.mulf %59, %62 : vector<8x394xf32>
    %cst_10 = arith.constant 2.000000e+01 : f32
    %64 = vector.broadcast %cst_10 : f32 to vector<8x394xf32>
    %65 = arith.cmpf ogt, %49, %64 : vector<8x394xf32>
    %66 = arith.mulf %49, %63 : vector<8x394xf32>
    %67 = arith.select %65, %49, %66 : vector<8x394xi1>, vector<8x394xf32>
    %68 = vector.extract_strided_slice %67 {offsets = [0, 0], sizes = [8, 392], strides = [1, 1]} : vector<8x394xf32> to vector<8x392xf32>
    %69 = vector.extract_strided_slice %67 {offsets = [0, 1], sizes = [8, 392], strides = [1, 1]} : vector<8x394xf32> to vector<8x392xf32>
    %70 = arith.maximumf %68, %69 : vector<8x392xf32>
    %71 = vector.extract_strided_slice %67 {offsets = [0, 2], sizes = [8, 392], strides = [1, 1]} : vector<8x394xf32> to vector<8x392xf32>
    %72 = arith.maximumf %70, %71 : vector<8x392xf32>
    %c0_11 = arith.constant 0 : index
    %c0_12 = arith.constant 0 : index
    %73 = vector.load %arg3[%c0_11, %c0_12] : memref<392x131xf32, #tpu.memory_space<vmem>>, vector<392x131xf32>
    %cst_13 = arith.constant dense<0.000000e+00> : vector<8x131xf32>
    %74 = tpu.matmul %72, %73, %cst_13 {dimension_numbers = #tpu.dot_dimension_numbers<[1], [0], [0], [1], [0, 0, 1, 1], [], []>} : vector<8x392xf32>, vector<392x131xf32>, vector<8x131xf32> -> vector<8x131xf32>
    %75 = vector.extract_strided_slice %74 {offsets = [0, 0], sizes = [8, 125], strides = [1, 1]} : vector<8x131xf32> to vector<8x125xf32>
    %76 = vector.extract_strided_slice %74 {offsets = [0, 1], sizes = [8, 125], strides = [1, 1]} : vector<8x131xf32> to vector<8x125xf32>
    %77 = vector.extract_strided_slice %74 {offsets = [0, 2], sizes = [8, 125], strides = [1, 1]} : vector<8x131xf32> to vector<8x125xf32>
    %78 = vector.extract_strided_slice %74 {offsets = [0, 3], sizes = [8, 125], strides = [1, 1]} : vector<8x131xf32> to vector<8x125xf32>
    %79 = vector.extract_strided_slice %74 {offsets = [0, 4], sizes = [8, 125], strides = [1, 1]} : vector<8x131xf32> to vector<8x125xf32>
    %80 = vector.extract_strided_slice %74 {offsets = [0, 5], sizes = [8, 125], strides = [1, 1]} : vector<8x131xf32> to vector<8x125xf32>
    %81 = vector.extract_strided_slice %74 {offsets = [0, 6], sizes = [8, 125], strides = [1, 1]} : vector<8x131xf32> to vector<8x125xf32>
    %82 = tpu.concatenate %75, %76, %77, %78, %79, %80, %81 in 0 : vector<8x125xf32>, vector<8x125xf32>, vector<8x125xf32>, vector<8x125xf32>, vector<8x125xf32>, vector<8x125xf32>, vector<8x125xf32> -> vector<56x125xf32>
    %c16 = arith.constant 16 : index
    %c0_14 = arith.constant 0 : index
    %83 = vector.load %arg2[%c16, %c0_14] : memref<608x128xf32, #tpu.memory_space<vmem>>, vector<16x56xf32>
    %cst_15 = arith.constant dense<0.000000e+00> : vector<16x125xf32>
    %84 = tpu.matmul %83, %82, %cst_15 {dimension_numbers = #tpu.dot_dimension_numbers<[1], [0], [0], [1], [0, 0, 1, 1], [], []>} : vector<16x56xf32>, vector<56x125xf32>, vector<16x125xf32> -> vector<16x125xf32>
    %c32 = arith.constant 32 : index
    %c0_16 = arith.constant 0 : index
    %85 = vector.load %arg2[%c32, %c0_16] : memref<608x128xf32, #tpu.memory_space<vmem>>, vector<16x1xf32>
    %c32_17 = arith.constant 32 : index
    %c1_18 = arith.constant 1 : index
    %86 = vector.load %arg2[%c32_17, %c1_18] : memref<608x128xf32, #tpu.memory_space<vmem>>, vector<16x1xf32>
    %87 = vector.broadcast %85 : vector<16x1xf32> to vector<16x125xf32>
    %88 = arith.mulf %87, %84 : vector<16x125xf32>
    %89 = vector.broadcast %86 : vector<16x1xf32> to vector<16x125xf32>
    %90 = arith.addf %88, %89 : vector<16x125xf32>
    %cst_19 = arith.constant 2.000000e+01 : f32
    %91 = vector.broadcast %cst_19 : f32 to vector<16x125xf32>
    %92 = arith.minimumf %90, %91 : vector<16x125xf32>
    %93 = math.exp %92 : vector<16x125xf32>
    %cst_20 = arith.constant 1.000000e+00 : f32
    %94 = vector.broadcast %cst_20 : f32 to vector<16x125xf32>
    %95 = arith.addf %94, %93 : vector<16x125xf32>
    %cst_21 = arith.constant 1.000000e+00 : f32
    %96 = vector.broadcast %cst_21 : f32 to vector<16x125xf32>
    %97 = arith.addf %96, %93 : vector<16x125xf32>
    %98 = arith.mulf %95, %97 : vector<16x125xf32>
    %cst_22 = arith.constant 1.000000e+00 : f32
    %99 = vector.broadcast %cst_22 : f32 to vector<16x125xf32>
    %100 = arith.subf %98, %99 : vector<16x125xf32>
    %cst_23 = arith.constant 1.000000e+00 : f32
    %101 = vector.broadcast %cst_23 : f32 to vector<16x125xf32>
    %102 = arith.addf %98, %101 : vector<16x125xf32>
    %103 = tpu.reciprocal %102 : vector<16x125xf32> -> vector<16x125xf32>
    %104 = arith.mulf %100, %103 : vector<16x125xf32>
    %cst_24 = arith.constant 2.000000e+01 : f32
    %105 = vector.broadcast %cst_24 : f32 to vector<16x125xf32>
    %106 = arith.cmpf ogt, %90, %105 : vector<16x125xf32>
    %107 = arith.mulf %90, %104 : vector<16x125xf32>
    %108 = arith.select %106, %90, %107 : vector<16x125xi1>, vector<16x125xf32>
    %109 = vector.extract_strided_slice %108 {offsets = [0, 0], sizes = [16, 123], strides = [1, 1]} : vector<16x125xf32> to vector<16x123xf32>
    %110 = vector.extract_strided_slice %108 {offsets = [0, 1], sizes = [16, 123], strides = [1, 1]} : vector<16x125xf32> to vector<16x123xf32>
    %111 = arith.maximumf %109, %110 : vector<16x123xf32>
    %112 = vector.extract_strided_slice %108 {offsets = [0, 2], sizes = [16, 123], strides = [1, 1]} : vector<16x125xf32> to vector<16x123xf32>
    %113 = arith.maximumf %111, %112 : vector<16x123xf32>
    %c48 = arith.constant 48 : index
    %c0_25 = arith.constant 0 : index
    %114 = vector.load %arg2[%c48, %c0_25] : memref<608x128xf32, #tpu.memory_space<vmem>>, vector<123x41xf32>
    %cst_26 = arith.constant dense<0.000000e+00> : vector<16x41xf32>
    %115 = tpu.matmul %113, %114, %cst_26 {dimension_numbers = #tpu.dot_dimension_numbers<[1], [0], [0], [1], [0, 0, 1, 1], [], []>} : vector<16x123xf32>, vector<123x41xf32>, vector<16x41xf32> -> vector<16x41xf32>
    %116 = tpu.transpose %115, [1, 0] : vector<16x41xf32> -> vector<41x16xf32>
    %117 = vector.extract_strided_slice %116 {offsets = [0, 0], sizes = [35, 16], strides = [1, 1]} : vector<41x16xf32> to vector<35x16xf32>
    %c176 = arith.constant 176 : index
    %c0_27 = arith.constant 0 : index
    %118 = vector.load %arg2[%c176, %c0_27] : memref<608x128xf32, #tpu.memory_space<vmem>>, vector<16x32xf32>
    %cst_28 = arith.constant dense<0.000000e+00> : vector<35x32xf32>
    %119 = tpu.matmul %117, %118, %cst_28 {dimension_numbers = #tpu.dot_dimension_numbers<[1], [0], [0], [1], [0, 0, 1, 1], [], []>} : vector<35x16xf32>, vector<16x32xf32>, vector<35x32xf32> -> vector<35x32xf32>
    %120 = vector.extract_strided_slice %116 {offsets = [1, 0], sizes = [35, 16], strides = [1, 1]} : vector<41x16xf32> to vector<35x16xf32>
    %c192 = arith.constant 192 : index
    %c0_29 = arith.constant 0 : index
    %121 = vector.load %arg2[%c192, %c0_29] : memref<608x128xf32, #tpu.memory_space<vmem>>, vector<16x32xf32>
    %cst_30 = arith.constant dense<0.000000e+00> : vector<35x32xf32>
    %122 = tpu.matmul %120, %121, %cst_30 {dimension_numbers = #tpu.dot_dimension_numbers<[1], [0], [0], [1], [0, 0, 1, 1], [], []>} : vector<35x16xf32>, vector<16x32xf32>, vector<35x32xf32> -> vector<35x32xf32>
    %123 = arith.addf %119, %122 : vector<35x32xf32>
    %124 = vector.extract_strided_slice %116 {offsets = [2, 0], sizes = [35, 16], strides = [1, 1]} : vector<41x16xf32> to vector<35x16xf32>
    %c208 = arith.constant 208 : index
    %c0_31 = arith.constant 0 : index
    %125 = vector.load %arg2[%c208, %c0_31] : memref<608x128xf32, #tpu.memory_space<vmem>>, vector<16x32xf32>
    %cst_32 = arith.constant dense<0.000000e+00> : vector<35x32xf32>
    %126 = tpu.matmul %124, %125, %cst_32 {dimension_numbers = #tpu.dot_dimension_numbers<[1], [0], [0], [1], [0, 0, 1, 1], [], []>} : vector<35x16xf32>, vector<16x32xf32>, vector<35x32xf32> -> vector<35x32xf32>
    %127 = arith.addf %123, %126 : vector<35x32xf32>
    %128 = vector.extract_strided_slice %116 {offsets = [3, 0], sizes = [35, 16], strides = [1, 1]} : vector<41x16xf32> to vector<35x16xf32>
    %c224 = arith.constant 224 : index
    %c0_33 = arith.constant 0 : index
    %129 = vector.load %arg2[%c224, %c0_33] : memref<608x128xf32, #tpu.memory_space<vmem>>, vector<16x32xf32>
    %cst_34 = arith.constant dense<0.000000e+00> : vector<35x32xf32>
    %130 = tpu.matmul %128, %129, %cst_34 {dimension_numbers = #tpu.dot_dimension_numbers<[1], [0], [0], [1], [0, 0, 1, 1], [], []>} : vector<35x16xf32>, vector<16x32xf32>, vector<35x32xf32> -> vector<35x32xf32>
    %131 = arith.addf %127, %130 : vector<35x32xf32>
    %132 = vector.extract_strided_slice %116 {offsets = [4, 0], sizes = [35, 16], strides = [1, 1]} : vector<41x16xf32> to vector<35x16xf32>
    %c240 = arith.constant 240 : index
    %c0_35 = arith.constant 0 : index
    %133 = vector.load %arg2[%c240, %c0_35] : memref<608x128xf32, #tpu.memory_space<vmem>>, vector<16x32xf32>
    %cst_36 = arith.constant dense<0.000000e+00> : vector<35x32xf32>
    %134 = tpu.matmul %132, %133, %cst_36 {dimension_numbers = #tpu.dot_dimension_numbers<[1], [0], [0], [1], [0, 0, 1, 1], [], []>} : vector<35x16xf32>, vector<16x32xf32>, vector<35x32xf32> -> vector<35x32xf32>
    %135 = arith.addf %131, %134 : vector<35x32xf32>
    %136 = vector.extract_strided_slice %116 {offsets = [5, 0], sizes = [35, 16], strides = [1, 1]} : vector<41x16xf32> to vector<35x16xf32>
    %c256 = arith.constant 256 : index
    %c0_37 = arith.constant 0 : index
    %137 = vector.load %arg2[%c256, %c0_37] : memref<608x128xf32, #tpu.memory_space<vmem>>, vector<16x32xf32>
    %cst_38 = arith.constant dense<0.000000e+00> : vector<35x32xf32>
    %138 = tpu.matmul %136, %137, %cst_38 {dimension_numbers = #tpu.dot_dimension_numbers<[1], [0], [0], [1], [0, 0, 1, 1], [], []>} : vector<35x16xf32>, vector<16x32xf32>, vector<35x32xf32> -> vector<35x32xf32>
    %139 = arith.addf %135, %138 : vector<35x32xf32>
    %140 = vector.extract_strided_slice %116 {offsets = [6, 0], sizes = [35, 16], strides = [1, 1]} : vector<41x16xf32> to vector<35x16xf32>
    %c272 = arith.constant 272 : index
    %c0_39 = arith.constant 0 : index
    %141 = vector.load %arg2[%c272, %c0_39] : memref<608x128xf32, #tpu.memory_space<vmem>>, vector<16x32xf32>
    %cst_40 = arith.constant dense<0.000000e+00> : vector<35x32xf32>
    %142 = tpu.matmul %140, %141, %cst_40 {dimension_numbers = #tpu.dot_dimension_numbers<[1], [0], [0], [1], [0, 0, 1, 1], [], []>} : vector<35x16xf32>, vector<16x32xf32>, vector<35x32xf32> -> vector<35x32xf32>
    %143 = arith.addf %139, %142 : vector<35x32xf32>
    %c288 = arith.constant 288 : index
    %c0_41 = arith.constant 0 : index
    %144 = vector.load %arg2[%c288, %c0_41] : memref<608x128xf32, #tpu.memory_space<vmem>>, vector<1x32xf32>
    %c289 = arith.constant 289 : index
    %c0_42 = arith.constant 0 : index
    %145 = vector.load %arg2[%c289, %c0_42] : memref<608x128xf32, #tpu.memory_space<vmem>>, vector<1x32xf32>
    %146 = vector.broadcast %144 : vector<1x32xf32> to vector<35x32xf32>
    %147 = arith.mulf %146, %143 : vector<35x32xf32>
    %148 = vector.broadcast %145 : vector<1x32xf32> to vector<35x32xf32>
    %149 = arith.addf %147, %148 : vector<35x32xf32>
    %cst_43 = arith.constant 2.000000e+01 : f32
    %150 = vector.broadcast %cst_43 : f32 to vector<35x32xf32>
    %151 = arith.minimumf %149, %150 : vector<35x32xf32>
    %152 = math.exp %151 : vector<35x32xf32>
    %cst_44 = arith.constant 1.000000e+00 : f32
    %153 = vector.broadcast %cst_44 : f32 to vector<35x32xf32>
    %154 = arith.addf %153, %152 : vector<35x32xf32>
    %cst_45 = arith.constant 1.000000e+00 : f32
    %155 = vector.broadcast %cst_45 : f32 to vector<35x32xf32>
    %156 = arith.addf %155, %152 : vector<35x32xf32>
    %157 = arith.mulf %154, %156 : vector<35x32xf32>
    %cst_46 = arith.constant 1.000000e+00 : f32
    %158 = vector.broadcast %cst_46 : f32 to vector<35x32xf32>
    %159 = arith.subf %157, %158 : vector<35x32xf32>
    %cst_47 = arith.constant 1.000000e+00 : f32
    %160 = vector.broadcast %cst_47 : f32 to vector<35x32xf32>
    %161 = arith.addf %157, %160 : vector<35x32xf32>
    %162 = tpu.reciprocal %161 : vector<35x32xf32> -> vector<35x32xf32>
    %163 = arith.mulf %159, %162 : vector<35x32xf32>
    %cst_48 = arith.constant 2.000000e+01 : f32
    %164 = vector.broadcast %cst_48 : f32 to vector<35x32xf32>
    %165 = arith.cmpf ogt, %149, %164 : vector<35x32xf32>
    %166 = arith.mulf %149, %163 : vector<35x32xf32>
    %167 = arith.select %165, %149, %166 : vector<35x32xi1>, vector<35x32xf32>
    %168 = vector.extract_strided_slice %167 {offsets = [0, 0], sizes = [33, 32], strides = [1, 1]} : vector<35x32xf32> to vector<33x32xf32>
    %169 = vector.extract_strided_slice %167 {offsets = [1, 0], sizes = [33, 32], strides = [1, 1]} : vector<35x32xf32> to vector<33x32xf32>
    %170 = arith.maximumf %168, %169 : vector<33x32xf32>
    %171 = vector.extract_strided_slice %167 {offsets = [2, 0], sizes = [33, 32], strides = [1, 1]} : vector<35x32xf32> to vector<33x32xf32>
    %172 = arith.maximumf %170, %171 : vector<33x32xf32>
    %c296 = arith.constant 296 : index
    %c0_49 = arith.constant 0 : index
    %173 = vector.load %arg2[%c296, %c0_49] : memref<608x128xf32, #tpu.memory_space<vmem>>, vector<11x33xf32>
    %cst_50 = arith.constant dense<0.000000e+00> : vector<11x32xf32>
    %174 = tpu.matmul %173, %172, %cst_50 {dimension_numbers = #tpu.dot_dimension_numbers<[1], [0], [0], [1], [0, 0, 1, 1], [], []>} : vector<11x33xf32>, vector<33x32xf32>, vector<11x32xf32> -> vector<11x32xf32>
    %175 = vector.extract_strided_slice %174 {offsets = [0, 0], sizes = [5, 32], strides = [1, 1]} : vector<11x32xf32> to vector<5x32xf32>
    %c312 = arith.constant 312 : index
    %c0_51 = arith.constant 0 : index
    %176 = vector.load %arg2[%c312, %c0_51] : memref<608x128xf32, #tpu.memory_space<vmem>>, vector<32x64xf32>
    %cst_52 = arith.constant dense<0.000000e+00> : vector<5x64xf32>
    %177 = tpu.matmul %175, %176, %cst_52 {dimension_numbers = #tpu.dot_dimension_numbers<[1], [0], [0], [1], [0, 0, 1, 1], [], []>} : vector<5x32xf32>, vector<32x64xf32>, vector<5x64xf32> -> vector<5x64xf32>
    %178 = vector.extract_strided_slice %174 {offsets = [1, 0], sizes = [5, 32], strides = [1, 1]} : vector<11x32xf32> to vector<5x32xf32>
    %c344 = arith.constant 344 : index
    %c0_53 = arith.constant 0 : index
    %179 = vector.load %arg2[%c344, %c0_53] : memref<608x128xf32, #tpu.memory_space<vmem>>, vector<32x64xf32>
    %cst_54 = arith.constant dense<0.000000e+00> : vector<5x64xf32>
    %180 = tpu.matmul %178, %179, %cst_54 {dimension_numbers = #tpu.dot_dimension_numbers<[1], [0], [0], [1], [0, 0, 1, 1], [], []>} : vector<5x32xf32>, vector<32x64xf32>, vector<5x64xf32> -> vector<5x64xf32>
    %181 = arith.addf %177, %180 : vector<5x64xf32>
    %182 = vector.extract_strided_slice %174 {offsets = [2, 0], sizes = [5, 32], strides = [1, 1]} : vector<11x32xf32> to vector<5x32xf32>
    %c376 = arith.constant 376 : index
    %c0_55 = arith.constant 0 : index
    %183 = vector.load %arg2[%c376, %c0_55] : memref<608x128xf32, #tpu.memory_space<vmem>>, vector<32x64xf32>
    %cst_56 = arith.constant dense<0.000000e+00> : vector<5x64xf32>
    %184 = tpu.matmul %182, %183, %cst_56 {dimension_numbers = #tpu.dot_dimension_numbers<[1], [0], [0], [1], [0, 0, 1, 1], [], []>} : vector<5x32xf32>, vector<32x64xf32>, vector<5x64xf32> -> vector<5x64xf32>
    %185 = arith.addf %181, %184 : vector<5x64xf32>
    %186 = vector.extract_strided_slice %174 {offsets = [3, 0], sizes = [5, 32], strides = [1, 1]} : vector<11x32xf32> to vector<5x32xf32>
    %c408 = arith.constant 408 : index
    %c0_57 = arith.constant 0 : index
    %187 = vector.load %arg2[%c408, %c0_57] : memref<608x128xf32, #tpu.memory_space<vmem>>, vector<32x64xf32>
    %cst_58 = arith.constant dense<0.000000e+00> : vector<5x64xf32>
    %188 = tpu.matmul %186, %187, %cst_58 {dimension_numbers = #tpu.dot_dimension_numbers<[1], [0], [0], [1], [0, 0, 1, 1], [], []>} : vector<5x32xf32>, vector<32x64xf32>, vector<5x64xf32> -> vector<5x64xf32>
    %189 = arith.addf %185, %188 : vector<5x64xf32>
    %190 = vector.extract_strided_slice %174 {offsets = [4, 0], sizes = [5, 32], strides = [1, 1]} : vector<11x32xf32> to vector<5x32xf32>
    %c440 = arith.constant 440 : index
    %c0_59 = arith.constant 0 : index
    %191 = vector.load %arg2[%c440, %c0_59] : memref<608x128xf32, #tpu.memory_space<vmem>>, vector<32x64xf32>
    %cst_60 = arith.constant dense<0.000000e+00> : vector<5x64xf32>
    %192 = tpu.matmul %190, %191, %cst_60 {dimension_numbers = #tpu.dot_dimension_numbers<[1], [0], [0], [1], [0, 0, 1, 1], [], []>} : vector<5x32xf32>, vector<32x64xf32>, vector<5x64xf32> -> vector<5x64xf32>
    %193 = arith.addf %189, %192 : vector<5x64xf32>
    %194 = vector.extract_strided_slice %174 {offsets = [5, 0], sizes = [5, 32], strides = [1, 1]} : vector<11x32xf32> to vector<5x32xf32>
    %c472 = arith.constant 472 : index
    %c0_61 = arith.constant 0 : index
    %195 = vector.load %arg2[%c472, %c0_61] : memref<608x128xf32, #tpu.memory_space<vmem>>, vector<32x64xf32>
    %cst_62 = arith.constant dense<0.000000e+00> : vector<5x64xf32>
    %196 = tpu.matmul %194, %195, %cst_62 {dimension_numbers = #tpu.dot_dimension_numbers<[1], [0], [0], [1], [0, 0, 1, 1], [], []>} : vector<5x32xf32>, vector<32x64xf32>, vector<5x64xf32> -> vector<5x64xf32>
    %197 = arith.addf %193, %196 : vector<5x64xf32>
    %198 = vector.extract_strided_slice %174 {offsets = [6, 0], sizes = [5, 32], strides = [1, 1]} : vector<11x32xf32> to vector<5x32xf32>
    %c504 = arith.constant 504 : index
    %c0_63 = arith.constant 0 : index
    %199 = vector.load %arg2[%c504, %c0_63] : memref<608x128xf32, #tpu.memory_space<vmem>>, vector<32x64xf32>
    %cst_64 = arith.constant dense<0.000000e+00> : vector<5x64xf32>
    %200 = tpu.matmul %198, %199, %cst_64 {dimension_numbers = #tpu.dot_dimension_numbers<[1], [0], [0], [1], [0, 0, 1, 1], [], []>} : vector<5x32xf32>, vector<32x64xf32>, vector<5x64xf32> -> vector<5x64xf32>
    %201 = arith.addf %197, %200 : vector<5x64xf32>
    %c536 = arith.constant 536 : index
    %c0_65 = arith.constant 0 : index
    %202 = vector.load %arg2[%c536, %c0_65] : memref<608x128xf32, #tpu.memory_space<vmem>>, vector<1x64xf32>
    %c537 = arith.constant 537 : index
    %c0_66 = arith.constant 0 : index
    %203 = vector.load %arg2[%c537, %c0_66] : memref<608x128xf32, #tpu.memory_space<vmem>>, vector<1x64xf32>
    %204 = vector.broadcast %202 : vector<1x64xf32> to vector<5x64xf32>
    %205 = arith.mulf %204, %201 : vector<5x64xf32>
    %206 = vector.broadcast %203 : vector<1x64xf32> to vector<5x64xf32>
    %207 = arith.addf %205, %206 : vector<5x64xf32>
    %cst_67 = arith.constant 2.000000e+01 : f32
    %208 = vector.broadcast %cst_67 : f32 to vector<5x64xf32>
    %209 = arith.minimumf %207, %208 : vector<5x64xf32>
    %210 = math.exp %209 : vector<5x64xf32>
    %cst_68 = arith.constant 1.000000e+00 : f32
    %211 = vector.broadcast %cst_68 : f32 to vector<5x64xf32>
    %212 = arith.addf %211, %210 : vector<5x64xf32>
    %cst_69 = arith.constant 1.000000e+00 : f32
    %213 = vector.broadcast %cst_69 : f32 to vector<5x64xf32>
    %214 = arith.addf %213, %210 : vector<5x64xf32>
    %215 = arith.mulf %212, %214 : vector<5x64xf32>
    %cst_70 = arith.constant 1.000000e+00 : f32
    %216 = vector.broadcast %cst_70 : f32 to vector<5x64xf32>
    %217 = arith.subf %215, %216 : vector<5x64xf32>
    %cst_71 = arith.constant 1.000000e+00 : f32
    %218 = vector.broadcast %cst_71 : f32 to vector<5x64xf32>
    %219 = arith.addf %215, %218 : vector<5x64xf32>
    %220 = tpu.reciprocal %219 : vector<5x64xf32> -> vector<5x64xf32>
    %221 = arith.mulf %217, %220 : vector<5x64xf32>
    %cst_72 = arith.constant 2.000000e+01 : f32
    %222 = vector.broadcast %cst_72 : f32 to vector<5x64xf32>
    %223 = arith.cmpf ogt, %207, %222 : vector<5x64xf32>
    %224 = arith.mulf %207, %221 : vector<5x64xf32>
    %225 = arith.select %223, %207, %224 : vector<5x64xi1>, vector<5x64xf32>
    %226 = vector.extract_strided_slice %225 {offsets = [0, 0], sizes = [3, 64], strides = [1, 1]} : vector<5x64xf32> to vector<3x64xf32>
    %cst_73 = arith.constant dense<0xFF800000> : vector<64xf32>
    %227 = vector.multi_reduction <maximumf>, %226, %cst_73 [0] : vector<3x64xf32> to vector<64xf32>
    %228 = vector.shape_cast %227 : vector<64xf32> to vector<1x64xf32>
    %c544 = arith.constant 544 : index
    %c0_74 = arith.constant 0 : index
    %229 = vector.load %arg2[%c544, %c0_74] : memref<608x128xf32, #tpu.memory_space<vmem>>, vector<64x5xf32>
    %cst_75 = arith.constant dense<0.000000e+00> : vector<1x5xf32>
    %230 = tpu.matmul %228, %229, %cst_75 {dimension_numbers = #tpu.dot_dimension_numbers<[1], [0], [0], [1], [0, 0, 1, 1], [], []>} : vector<1x64xf32>, vector<64x5xf32>, vector<1x5xf32> -> vector<1x5xf32>
    %c0_76 = arith.constant 0 : index
    %c0_77 = arith.constant 0 : index
    %c0_78 = arith.constant 0 : index
    %231 = vector.load %arg4[%c0_76, %c0_77, %c0_78] : memref<1x1x5xf32, #tpu.memory_space<vmem>>, vector<1x1x5xf32>
    %232 = vector.shape_cast %231 : vector<1x1x5xf32> to vector<1x5xf32>
    %233 = vector.shape_cast %230 : vector<1x5xf32> to vector<1x1x5xf32>
    tpu.vector_store %arg4[%c0_76, %c0_77, %c0_78], %233 {strides = array<i32>} : memref<1x1x5xf32, #tpu.memory_space<vmem>>, vector<1x1x5xf32>,
    return
  }
  func.func @transform_0(%arg0: i32) -> (i32, i32, i32) {
    %c0_i32 = arith.constant 0 : i32
    %c0_i32_0 = arith.constant 0 : i32
    %c0_i32_1 = arith.constant 0 : i32
    return %arg0, %c0_i32, %c0_i32_0 : i32, i32, i32
  }
  func.func @transform_1(%arg0: i32) -> (i32, i32) {
    %c0_i32 = arith.constant 0 : i32
    %c0_i32_0 = arith.constant 0 : i32
    %c0_i32_1 = arith.constant 0 : i32
    return %c0_i32, %c0_i32_0 : i32, i32
  }
  func.func @transform_2(%arg0: i32) -> (i32, i32) {
    %c0_i32 = arith.constant 0 : i32
    %c0_i32_0 = arith.constant 0 : i32
    %c0_i32_1 = arith.constant 0 : i32
    return %c0_i32, %c0_i32_0 : i32, i32
  }
  func.func @transform_3(%arg0: i32) -> (i32, i32, i32) {
    %c0_i32 = arith.constant 0 : i32
    %c0_i32_0 = arith.constant 0 : i32
    %c0_i32_1 = arith.constant 0 : i32
    return %arg0, %c0_i32, %c0_i32_0 : i32, i32, i32
  }
}

</mosaic_0001>

<bundles_post_ra>
// kernel: tpu_custom_call.1
= control target key start
LH: loop header
LB: loop body
LE: loop exit
PB: predicated region body
PF: predicated region fallthrough
CT: control target
= control target key end

     0   :  { %8 = vsyncpa [#allocation3], 0  ;;  %s4991_s0 = inlined_call_operand.vmem [shape: f32[2,1,400], index: 0, kind: input, shape index: {}]   ;;  %s4992_s1 = inlined_call_operand.vmem [shape: f32[608,128], index: 1, kind: input, shape index: {}]   ;;  %s4993_s2 = inlined_call_operand.vmem [shape: f32[392,131], index: 2, kind: input, shape index: {}]   ;;  %s4994_s3 = inlined_call_operand.hbm [shape: f32[2,1,5], index: 3, kind: output, shape index: {}]  }
   0x1   :  { %10 = vsyncpa [#allocation3 + $0x1], 0  ;;  %s3840_s12 = smov 0   ;;  %s3842_s13 = smov 0  }
   0x2   :  { %s3844_s14 = smov 0   ;;  %s3846_s15 = smov 0  }
   0x3 LB: > { %s3861_s16 = sadd.s32 4294967295, %s3800_s15   ;;  %s2807_s17 = sadd.s32 4294967294, %s3800_s15   ;;  %s3800_s15 = sphi %s3846_s15, %s5000_s15   ;;  %s3796_s14 = sphi %s3844_s14, %s4999_s14   ;;  %s3792_s13 = sphi %s3842_s13, %s4998_s13   ;;  %s3788_s12 = sphi %s3840_s12, %s4997_s12  }
   0x4   : > { %s3865_s18 = sadd.s32 1, %s3800_s15   ;;  %s91_s19 = sadd.s32 1, %s3796_s14 }
   0x5   : > { %s88_s20 = ssub.s32 %s3800_s15, %s3865_s18  ;;  %p101_p0 = scmp.ne.s32.totalorder %s3796_s14, %s3792_s13 }
   0x6   : > { %p89_p1 = scmp.eq.s32.totalorder %s88_s20, 0  ;;  %p102_p2 = scmp.eq.s32.totalorder %s3861_s16, 1 }
   0x7   : > { %p107_p3 = scmp.ne.s32.totalorder %s3792_s13, %s3788_s12  ;;  %p108_p4 = scmp.eq.s32.totalorder %s2807_s17, 1 }
   0x8   : > { %s3876_s21 = scalar_select %p89_p1, %s3796_s14, %s91_s19  }
   0x9   : > { %p3878_p5 = por %p102_p2, %p101_p0  ;;  %p3882_p6 = por %p108_p4, %p107_p3 }
   0xa   : > { %p2810_p7 = scmp.ge.s32.totalorder %s3800_s15, 1  ;;  %p139_p8 = scmp.lt.s32.totalorder %s3800_s15, 3 }
   0xc   : > { %p140_p9 = pnand %p2810_p7, %p139_p8 }
   0xd   : > { %v166_v0 = vld [vmem:[%s4992_s1] sm:$0xff] (!%p140_p9)  ;;  %v3802_v1 = vmov (!%p140_p9), 1   ;;  %v3803_v2 = vmov (!%p140_p9), 3   ;;  %v3804_v3 = vmov (!%p140_p9), 2   ;;  %v3805_v4 = vmov (!%p140_p9), 4   ;;  %v389_v7 = vld [vmem:[%s4992_s1 + $0x8] sm:$0xff] (!%p140_p9) }
   0xe   : > { %143 = sbr.rel (%p140_p9) target bundleno = 2749 (0xabd), region = 32  ;;  %3659 = vset.pattern.permute.xlu0 (!%p140_p9), %v3802_v1  ;;  %3661 = vset.pattern.permute.xlu1 (!%p140_p9), %v3803_v2  ;;  %v3806_v5 = vmov (!%p140_p9), 5   ;;  %v3807_v6 = vmov (!%p140_p9), 6   ;;  %v3808_v8 = vmov (!%p140_p9), 0   ;;  %p161_p10 = scmp.lt.s32.totalorder (!%p140_p9), %s3861_s16, 1  ;;  %v168_v9 = vlaneseq (!%p140_p9)  ;;  %v498_v50 = vld [vmem:[%s4993_s2 + $0x8] sm:$0xff] (!%p140_p9) }
   0xf   : > { %198 = vperm.xlu0 (!%p140_p9), %3659, %v166_v0   ;;  %262 = vperm.xlu1 (!%p140_p9), %3661, %v166_v0   ;;  %s3809_s6 = smov (!%p140_p9), 127   ;;  %s3810_s7 = smov (!%p140_p9), 126   ;;  %v500_v51 = vld [vmem:[%s4993_s2 + $0x18] sm:$0xff] (!%p140_p9)  ;;  %v497_v52 = vld [vmem:[%s4993_s2] sm:$0xff] (!%p140_p9)  ;;  %v499_v54 = vld [vmem:[%s4993_s2 + $0x10] sm:$0xff] (!%p140_p9)  ;;  %vm217_vm0 = vcmask (!%p140_p9), 1039360  }
  0x10   : > { %v169_v10 = vshrl.u32 (!%p140_p9), %v168_v9, 7  ;;  %s3811_s8 = smov (!%p140_p9), 125   ;;  %s3812_s9 = smov (!%p140_p9), 124   ;;  %v3304_v53 = vpack.c.bf16 (!%p140_p9), %v500_v51, %v498_v50  ;;  %v502_v55 = vld [vmem:[%s4993_s2 + $0x28] sm:$0xff] (!%p140_p9)  ;;  %v504_v56 = vld [vmem:[%s4993_s2 + $0x38] sm:$0xff] (!%p140_p9)  ;;  %v3306_v57 = vpack.c.bf16 (!%p140_p9), %v499_v54, %v497_v52  ;;  %v501_v59 = vld [vmem:[%s4993_s2 + $0x20] sm:$0xff] (!%p140_p9) }
  0x11   : > { %s3813_s10 = smov (!%p140_p9), 123   ;;  %s3814_s11 = smov (!%p140_p9), 122   ;;  %v3308_v58 = vpack.c.bf16 (!%p140_p9), %v504_v56, %v502_v55  ;;  %v503_v60 = vld [vmem:[%s4993_s2 + $0x30] sm:$0xff] (!%p140_p9)  ;;  %v506_v61 = vld [vmem:[%s4993_s2 + $0x48] sm:$0xff] (!%p140_p9)  ;;  %v508_v62 = vld [vmem:[%s4993_s2 + $0x58] sm:$0xff] (!%p140_p9)  ;;  %vm249_vm1 = vcmask (!%p140_p9), 1031168  }
  0x12   : > { %v178_v11 = vsub.s32 (!%p140_p9), 2, %v169_v10  ;;  %v174_v12 = vsub.s32 (!%p140_p9), 1, %v169_v10  ;;  %v182_v16 = vsub.s32 (!%p140_p9), 3, %v169_v10  ;;  %v170_v17 = vsub.s32 (!%p140_p9), 0, %v169_v10  ;;  %3305 = vmatprep.subr.bf16.mxu0 (!%p140_p9), %v3304_v53  ;;  %v505_v2 = vld [vmem:[%s4993_s2 + $0x40] sm:$0xff] (!%p140_p9)  ;;  %v511_v10 = vld [vmem:[%s4993_s2 + $0x70] sm:$0xff] (!%p140_p9) }
  0x13   : > { %3660 = vset.pattern.permute.xlu0 (!%p140_p9), %v3804_v3  ;;  %3662 = vset.pattern.permute.xlu1 (!%p140_p9), %v3805_v4  ;;  %v3310_v63 = vpack.c.bf16 (!%p140_p9), %v503_v60, %v501_v59  ;;  %v507_v3 = vld [vmem:[%s4993_s2 + $0x50] sm:$0xff] (!%p140_p9)  ;;  %v510_v4 = vld [vmem:[%s4993_s2 + $0x68] sm:$0xff] (!%p140_p9)  ;;  %v509_v9 = vld [vmem:[%s4993_s2 + $0x60] sm:$0xff] (!%p140_p9)  ;;  %vm281_vm2 = vcmask (!%p140_p9), 1022976   ;;  %vm313_vm3 = vcmask (!%p140_p9), 1014784   ;;  %vm345_vm4 = vcmask (!%p140_p9), 1006592  }
  0x14   : > { %230 = vperm.xlu0 (!%p140_p9), %3660, %v166_v0   ;;  %294 = vperm.xlu1 (!%p140_p9), %3662, %v166_v0   ;;  %v529_v51 = vld [vmem:[%s4993_s2 + $0x100] sm:$0xff] (!%p140_p9)  ;;  %v531_v52 = vld [vmem:[%s4993_s2 + $0x110] sm:$0xff] (!%p140_p9)  ;;  %v534_v53 = vld [vmem:[%s4993_s2 + $0x128] sm:$0xff] (!%p140_p9)  ;;  %vm377_vm5 = vcmask (!%p140_p9), 998400   ;;  %vm595_vm10 = vcmask (!%p140_p9), 64512   ;;  %vm772_vm11 = vcmask (!%p140_p9), 457728  }
  0x15   : > { %s162_s28 = scalar_select %p161_p10, %s3861_s16, 1  ;;  %3307 = vmatpush1.bf16.msra.mxu0 %v3306_v57  ;;  %v536_v54 = vld [vmem:[%s4993_s2 + $0x138] sm:$0xff]  ;;  %v3338_v55 = vpack.c.bf16 %v531_v52, %v529_v51  ;;  %v535_v59 = vld [vmem:[%s4993_s2 + $0x130] sm:$0xff]  ;;  %v538_v60 = vld [vmem:[%s4993_s2 + $0x148] sm:$0xff]  ;;  %vm942_vm12 = vcmask 1042432   ;;  %vm3815_vm13 = vmmov 1  }
  0x16   : > { %3309 = vmatprep.subr.bf16.mxu0 %v3308_v58  ;;  %v3340_v57 = vpack.c.bf16 %v536_v54, %v534_v53  ;;  %v533_v58 = vld [vmem:[%s4993_s2 + $0x120] sm:$0xff]  ;;  %vm3441_vm14 = vmpackc.low %vm942_vm12, %vm3815_vm13  ;;  %s159_s4 = sand.u32 1, %s3792_s13  }
  0x17   : > { %s2811_s29 = sshll.u32 %s162_s28, 2  ;;  %s160_s17 = scalar_lea.vmem [#allocation2], %s159_s4 }
  0x18   : > { %3663 = vset.pattern.permute.xlu1 %v3806_v5  ;;  %3664 = vset.pattern.permute.xlu0 %v3807_v6  ;;  %s164_s5 = scalar_lea.vmem %s4991_s0, %s2811_s29  ;;  %v512_v5 = vld [vmem:[%s4993_s2 + $0x78] sm:$0xff]  ;;  %v3314_v6 = vpack.c.bf16 %v507_v3, %v505_v2  ;;  %v537_v3 = vld [vmem:[%s4993_s2 + $0x140] sm:$0xff]  ;;  %s2752_s19 = sshll.u32 %s160_s17, 4  ;;  %s4951_s19 = int_to_ptr.vmem [resolvable:$true] %s2752_s19 }
  0x19   : > { %326 = vperm.xlu1 %3663, %v166_v0   ;;  %358 = vperm.xlu0 %3664, %v166_v0   ;;  %v165_v13 = vld [vmem:[%s164_s5] sm:$0xf]  ;;  %s2880_s5 = sshll.u32 %s3861_s16, 4  ;;  %s2740_s26 = scalar_lea.sflag [#allocation3], %s159_s4 }
  0x1a   : > { %v3901_v14 = vrot.slane %v165_v13, %v178_v11  ;;  %v3903_v15 = vrot.slane %v165_v13, %v174_v12  ;;  %v3907_v21 = vrot.slane %v165_v13, %v182_v16  ;;  %v3909_v22 = vrot.slane %v165_v13, %v170_v17  ;;  %3311 = vmatpush1.bf16.msra.mxu0 %v3310_v63  ;;  %v514_v11 = vld [vmem:[%s4993_s2 + $0x88] sm:$0xff]  ;;  %v516_v12 = vld [vmem:[%s4993_s2 + $0x98] sm:$0xff]  ;;  %v513_v17 = vld [vmem:[%s4993_s2 + $0x80] sm:$0xff]  ;;  %s4949_s25 = scalar_lea.hbm %s4994_s3, %s2880_s5  ;;  %s3738_s27 = scalar_lea.vmem %s4951_s19, 16 }
  0x1b   : > { %v3318_v13 = vpack.c.bf16 %v511_v10, %v509_v9  ;;  %v3320_v16 = vpack.c.bf16 %v516_v12, %v514_v11  ;;  %v3342_v63 = vpack.c.bf16 %v535_v59, %v533_v58  ;;  %v541_v12 = vld [vmem:[%s4993_s2 + $0x160] sm:$0xff]  ;;  %p3739_p11 = scmp.ne.s32.totalorder %s4951_s19, %s3738_s27  ;;  %s3819_s16 = smov [#allocation2]  }
  0x1c   : > { %s3742_s28 = sshll.u32 %s3819_s16, 4  ;;  %s3743_s28 = int_to_ptr.vmem [resolvable:$false] %s3742_s28 }
  0x1d   : > { %3666 = vset.pattern.permute.xlu0 %v3802_v1  ;;  %3665 = vset.pattern.permute.xlu1 %v3808_v8  ;;  %p3740_p12 = pnand %p3739_p11, %p3878_p5  ;;  %p3745_p0 = scmp.lt.s32.totalorder %s4951_s19, %s3743_s28 }
  0x1e   : > { %400 = vperm.xlu0 %3666, %v389_v7   ;;  %190 = vperm.xlu1 %3665, %v166_v0   ;;  %v3312_v0 = vpack.c.bf16 %v508_v62, %v506_v61  ;;  %v540_v61 = vld [vmem:[%s4993_s2 + $0x158] sm:$0xff] }
  0x1f   : > { %v3344_v2 = vpack.c.bf16 %v540_v61, %v538_v60  ;;  %p3741_p13 = pneg %p3740_p12 }
  0x20   : > { %3313 = vmatprep.subr.bf16.mxu0 %v3312_v0 }
  0x21   : > { %3315 = vmatpush1.bf16.msra.mxu0 %v3314_v6  ;;  %v544_v6 = vld [vmem:[%s4993_s2 + $0x178] sm:$0xff] }
  0x22   : > { %3667 = vset.pattern.permute.xlu0 %v3808_v8  ;;  %v3316_v8 = vpack.c.bf16 %v512_v5, %v510_v4  ;;  %v539_v4 = vld [vmem:[%s4993_s2 + $0x150] sm:$0xff]  ;;  %v542_v5 = vld [vmem:[%s4993_s2 + $0x168] sm:$0xff] }
  0x23   : > { %392 = vperm.xlu0 %3667, %v389_v7   ;;  %v3348_v11 = vpack.c.bf16 %v544_v6, %v542_v5 }
  0x24   : > { %3317 = vmatprep.subr.bf16.mxu0 %v3316_v8  ;;  %v3346_v8 = vpack.c.bf16 %v539_v4, %v537_v3 }
  0x25   : > { %3319 = vmatpush1.bf16.msra.mxu0 %v3318_v13  ;;  %v543_v13 = vld [vmem:[%s4993_s2 + $0x170] sm:$0xff] }
  0x26   : > { %3321 = vmatprep.subr.bf16.mxu0 %v3320_v16  ;;  %v546_v16 = vld [vmem:[%s4993_s2 + $0x188] sm:$0xff] }
  0x8e   : > { %v199_v18 = vpop.permute.xlu0 %198  ;;  %v263_v28 = vpop.permute.xlu1 %262 }
  0x8f   : > { %v203_v19 = vmul.f32 %v199_v18, %v3901_v14  ;;  %v202_v20 = vmul.f32 %v199_v18, %v3903_v15  ;;  %v204_v23 = vmul.f32 %v199_v18, %v3907_v21  ;;  %v201_v24 = vmul.f32 %v199_v18, %v3909_v22  ;;  %v515_v18 = vld [vmem:[%s4993_s2 + $0x90] sm:$0xff] }
  0x90   : > { %v266_v31 = vmul.f32 %v263_v28, %v3903_v15  ;;  %v267_v32 = vmul.f32 %v263_v28, %v3901_v14  ;;  %v268_v34 = vmul.f32 %v263_v28, %v3907_v21  ;;  %v265_v35 = vmul.f32 %v263_v28, %v3909_v22  ;;  %v519_v28 = vld [vmem:[%s4993_s2 + $0xb0] sm:$0xff] }
  0x91   : > { %213 = vrot.lane.b32.xlu0 %v203_v19, %s3809_s6  ;;  %211 = vrot.lane.b32.xlu1 %v202_v20, %s3809_s6  ;;  %v518_v19 = vld [vmem:[%s4993_s2 + $0xa8] sm:$0xff]  ;;  %v520_v20 = vld [vmem:[%s4993_s2 + $0xb8] sm:$0xff] }
  0x93   : > { %v231_v25 = vpop.permute.xlu0 %230  ;;  %v295_v33 = vpop.permute.xlu1 %294 }
  0x94   : > { %v234_v26 = vmul.f32 %v231_v25, %v3903_v15  ;;  %v235_v27 = vmul.f32 %v231_v25, %v3901_v14  ;;  %v236_v29 = vmul.f32 %v231_v25, %v3907_v21  ;;  %v233_v30 = vmul.f32 %v231_v25, %v3909_v22 }
  0x95   : > { %215 = vrot.lane.b32.xlu1 %v204_v23, %s3809_s6  ;;  %209 = vrot.lane.b32.xlu0 %v201_v24, %s3809_s6  ;;  %v298_v36 = vmul.f32 %v295_v33, %v3903_v15  ;;  %v299_v37 = vmul.f32 %v295_v33, %v3901_v14  ;;  %v300_v41 = vmul.f32 %v295_v33, %v3907_v21 }
  0x96   : > { %v297_v43 = vmul.f32 %v295_v33, %v3909_v22  ;;  %v3322_v25 = vpack.c.bf16 %v515_v18, %v513_v17  ;;  %v548_v17 = vld [vmem:[%s4993_s2 + $0x198] sm:$0xff]  ;;  %v3350_v18 = vpack.c.bf16 %v543_v13, %v541_v12 }
  0x98   : > { %v327_v38 = vpop.permute.xlu1 %326  ;;  %v359_v40 = vpop.permute.xlu0 %358  ;;  %3323 = vmatpush1.bf16.msra.mxu0 %v3322_v25 }
  0x99   : > { %243 = vrot.lane.b32.xlu1 %v234_v26, %s3810_s7  ;;  %245 = vrot.lane.b32.xlu0 %v235_v27, %s3810_s7  ;;  %v331_v39 = vmul.f32 %v327_v38, %v3901_v14  ;;  %v363_v42 = vmul.f32 %v359_v40, %v3901_v14  ;;  %v330_v44 = vmul.f32 %v327_v38, %v3903_v15  ;;  %v517_v27 = vld [vmem:[%s4993_s2 + $0xa0] sm:$0xff] }
  0x9a   : > { %v361_v45 = vmul.f32 %v359_v40, %v3909_v22  ;;  %v332_v46 = vmul.f32 %v327_v38, %v3907_v21  ;;  %v329_v47 = vmul.f32 %v327_v38, %v3909_v22  ;;  %v362_v48 = vmul.f32 %v359_v40, %v3903_v15  ;;  %v528_v38 = vld [vmem:[%s4993_s2 + $0xf8] sm:$0xff] }
  0x9b   : > { %v364_v49 = vmul.f32 %v359_v40, %v3907_v21  ;;  %v3324_v26 = vpack.c.bf16 %v520_v20, %v518_v19  ;;  %v3352_v20 = vpack.c.bf16 %v548_v17, %v546_v16 }
  0x9d   : > { %247 = vrot.lane.b32.xlu1 %v236_v29, %s3810_s7  ;;  %241 = vrot.lane.b32.xlu0 %v233_v30, %s3810_s7  ;;  %v3999_v7 = vpop.permute.xlu0 %400  ;;  %v4025_v23 = vpop.permute.xlu1 %190  ;;  %v522_v29 = vld [vmem:[%s4993_s2 + $0xc8] sm:$0xff]  ;;  %v524_v30 = vld [vmem:[%s4993_s2 + $0xd8] sm:$0xff] }
  0x9e   : > { %3325 = vmatprep.subr.bf16.mxu0 %v3324_v26 }
  0xa1   : > { %275 = vrot.lane.b32.xlu1 %v266_v31, %s3811_s8  ;;  %277 = vrot.lane.b32.xlu0 %v267_v32, %s3811_s8  ;;  %v3326_v31 = vpack.c.bf16 %v519_v28, %v517_v27 }
  0xa2   : > { %v4027_v24 = vpop.permute.xlu0 %392 }
  0xa3   : > { %3327 = vmatpush1.bf16.msra.mxu0 %v3326_v31 }
  0xa5   : > { %279 = vrot.lane.b32.xlu1 %v268_v34, %s3811_s8  ;;  %273 = vrot.lane.b32.xlu0 %v265_v35, %s3811_s8  ;;  %v3328_v34 = vpack.c.bf16 %v524_v30, %v522_v29  ;;  %v521_v35 = vld [vmem:[%s4993_s2 + $0xc0] sm:$0xff] }
  0xa7   : > { %3329 = vmatprep.subr.bf16.mxu0 %v3328_v34 }
  0xa9   : > { %307 = vrot.lane.b32.xlu1 %v298_v36, %s3812_s9  ;;  %309 = vrot.lane.b32.xlu0 %v299_v37, %s3812_s9  ;;  %v523_v36 = vld [vmem:[%s4993_s2 + $0xd0] sm:$0xff]  ;;  %v526_v37 = vld [vmem:[%s4993_s2 + $0xe8] sm:$0xff] }
  0xad   : > { %311 = vrot.lane.b32.xlu1 %v300_v41, %s3812_s9  ;;  %341 = vrot.lane.b32.xlu0 %v331_v39, %s3813_s10  ;;  %v3330_v39 = vpack.c.bf16 %v523_v36, %v521_v35  ;;  %v194_v35 = vmul.f32 %v4025_v23, %v3903_v15  ;;  %v193_v36 = vmul.f32 %v4025_v23, %v3909_v22 }
  0xaf   : > { %3331 = vmatpush1.bf16.msra.mxu0 %v3330_v39 }
  0xb1   : > { %305 = vrot.lane.b32.xlu1 %v297_v43, %s3812_s9  ;;  %373 = vrot.lane.b32.xlu0 %v363_v42, %s3814_s11  ;;  %v3332_v42 = vpack.c.bf16 %v528_v38, %v526_v37  ;;  %v525_v43 = vld [vmem:[%s4993_s2 + $0xe0] sm:$0xff] }
  0xb3   : > { %3333 = vmatprep.subr.bf16.mxu0 %v3332_v42 }
  0xb5   : > { %339 = vrot.lane.b32.xlu1 %v330_v44, %s3813_s10  ;;  %369 = vrot.lane.b32.xlu0 %v361_v45, %s3814_s11  ;;  %v527_v44 = vld [vmem:[%s4993_s2 + $0xf0] sm:$0xff]  ;;  %v530_v45 = vld [vmem:[%s4993_s2 + $0x108] sm:$0xff] }
  0xb9   : > { %343 = vrot.lane.b32.xlu1 %v332_v46, %s3813_s10  ;;  %v532_v46 = vld [vmem:[%s4993_s2 + $0x118] sm:$0xff] }
  0xba   : > { %v3336_v50 = vpack.c.bf16 %v532_v46, %v530_v45  ;;  %v195_v45 = vmul.f32 %v4025_v23, %v3901_v14 }
  0xbd   : > { %337 = vrot.lane.b32.xlu1 %v329_v47, %s3813_s10  ;;  %v3334_v47 = vpack.c.bf16 %v527_v44, %v525_v43 }
  0xbf   : > { %3335 = vmatpush1.bf16.msra.mxu0 %v3334_v47 }
  0xc0   : > { %3337 = vmatprep.subr.bf16.mxu0 %v3336_v50 }
  0xc1   : > { %371 = vrot.lane.b32.xlu1 %v362_v48, %s3814_s11 }
  0xc3   : > { %3339 = vmatpush1.bf16.msra.mxu0 %v3338_v55 }
  0xc4   : > { %3341 = vmatprep.subr.bf16.mxu0 %v3340_v57 }
  0xc5   : > { %375 = vrot.lane.b32.xlu1 %v364_v49, %s3814_s11 }
  0xc7   : > { %3343 = vmatpush1.bf16.msra.mxu0 %v3342_v63 }
  0xc8   : > { %3345 = vmatprep.subr.bf16.mxu0 %v3344_v2 }
  0xcb   : > { %3347 = vmatpush1.bf16.msra.mxu0 %v3346_v8 }
  0xcc   : > { %3349 = vmatprep.subr.bf16.mxu0 %v3348_v11 }
  0xcf   : > { %3351 = vmatpush1.bf16.msra.mxu0 %v3350_v18 }
  0xd0   : > { %3353 = vmatprep.subr.bf16.mxu0 %v3352_v20 }
 0x103   : > { %v4041_v32 = vpop.permute.xlu0 %213  ;;  %v4043_v33 = vpop.permute.xlu1 %211 }
 0x104   : > { %v219_v31 = vsel %vm217_vm0, %v4043_v33, %v4041_v32 }
 0x105   : > { %v226_v39 = vadd.f32 %v219_v31, %v194_v35 }
 0x107   : > { %v4057_v40 = vpop.permute.xlu1 %215  ;;  %v4059_v41 = vpop.permute.xlu0 %209 }
 0x108   : > { %v218_v34 = vsel %vm217_vm0, %v4059_v41, %v4043_v33  ;;  %v196_v33 = vmul.f32 %v4025_v23, %v3907_v21  ;;  %v220_v15 = vsel %vm217_vm0, %v4041_v32, %v4057_v40 }
 0x109   : > { %v225_v42 = vadd.f32 %v218_v34, %v193_v36  ;;  %v227_v51 = vadd.f32 %v220_v15, %v195_v45 }
 0x10b   : > { %v244_v48 = vpop.permute.xlu1 %243  ;;  %v4073_v49 = vpop.permute.xlu0 %245 }
 0x10c   : > { %v251_v37 = vsel %vm249_vm1, %v244_v48, %v4073_v49 }
 0x10d   : > { %v258_v46 = vadd.f32 %v251_v37, %v226_v39 }
 0x10f   : > { %v4087_v56 = vpop.permute.xlu1 %247  ;;  %v242_v62 = vpop.permute.xlu0 %241 }
 0x110   : > { %v250_v38 = vsel %vm249_vm1, %v242_v62, %v244_v48  ;;  %v228_v48 = vadd.f32 %v4057_v40, %v196_v33  ;;  %v252_v21 = vsel %vm249_vm1, %v4073_v49, %v4087_v56 }
 0x111   : > { %v257_v47 = vadd.f32 %v250_v38, %v225_v42  ;;  %v259_v57 = vadd.f32 %v252_v21, %v227_v51  ;;  %v547_v51 = vld [vmem:[%s4993_s2 + $0x190] sm:$0xff] }
 0x112   : > { %v260_v55 = vadd.f32 %v4087_v56, %v228_v48 }
 0x113   : > { %v276_v0 = vpop.permute.xlu1 %275  ;;  %v278_v9 = vpop.permute.xlu0 %277 }
 0x114   : > { %v283_v22 = vsel %vm281_vm2, %v276_v0, %v278_v9 }
 0x115   : > { %v290_v52 = vadd.f32 %v283_v22, %v258_v46 }
 0x117   : > { %v280_v10 = vpop.permute.xlu1 %279  ;;  %v274_v25 = vpop.permute.xlu0 %273 }
 0x118   : > { %v282_v41 = vsel %vm281_vm2, %v274_v25, %v276_v0  ;;  %v284_v14 = vsel %vm281_vm2, %v278_v9, %v280_v10  ;;  %v292_v60 = vadd.f32 %v280_v10, %v260_v55  ;;  %v552_v55 = vld [vmem:[%s4993_s2 + $0x1b8] sm:$0xff]  ;;  %vm1062_vm2 = vcmask 1046528  }
 0x119   : > { %v289_v53 = vadd.f32 %v282_v41, %v257_v47  ;;  %v291_v62 = vadd.f32 %v284_v14, %v259_v57 }
 0x11b   : > { %v308_v19 = vpop.permute.xlu1 %307  ;;  %v310_v27 = vpop.permute.xlu0 %309 }
 0x11c   : > { %v315_v50 = vsel %vm313_vm3, %v308_v19, %v310_v27 }
 0x11d   : > { %v322_v58 = vadd.f32 %v315_v50, %v290_v52 }
 0x11f   : > { %v312_v26 = vpop.permute.xlu1 %311  ;;  %v342_v30 = vpop.permute.xlu0 %341 }
 0x120   : > { %v316_v61 = vsel %vm313_vm3, %v310_v27, %v312_v26  ;;  %v324_v3 = vadd.f32 %v312_v26, %v292_v60 }
 0x121   : > { %v323_v6 = vadd.f32 %v316_v61, %v291_v62  ;;  %v553_v61 = vld [vmem:[%s4993_s2 + $0x1c0] sm:$0xff]  ;;  %v555_v62 = vld [vmem:[%s4993_s2 + $0x1d0] sm:$0xff] }
 0x123   : > { %v306_v28 = vpop.permute.xlu1 %305  ;;  %v374_v44 = vpop.permute.xlu0 %373 }
 0x124   : > { %v314_v32 = vsel %vm313_vm3, %v306_v28, %v308_v19 }
 0x125   : > { %v321_v59 = vadd.f32 %v314_v32, %v289_v53  ;;  %v545_v32 = vld [vmem:[%s4993_s2 + $0x180] sm:$0xff] }
 0x126   : > { %v3354_v53 = vpack.c.bf16 %v547_v51, %v545_v32 }
 0x127   : > { %v340_v29 = vpop.permute.xlu1 %339  ;;  %v370_v49 = vpop.permute.xlu0 %369 }
 0x128   : > { %v347_v23 = vsel %vm345_vm4, %v340_v29, %v342_v30  ;;  %3355 = vmatpush1.bf16.msra.mxu0 %v3354_v53 }
 0x129   : > { %v354_v63 = vadd.f32 %v347_v23, %v322_v58  ;;  %v549_v23 = vld [vmem:[%s4993_s2 + $0x1a0] sm:$0xff]  ;;  %v554_v58 = vld [vmem:[%s4993_s2 + $0x1c8] sm:$0xff] }
 0x12b   : > { %v344_v43 = vpop.permute.xlu1 %343 }
 0x12c   : > { %v348_v56 = vsel %vm345_vm4, %v342_v30, %v344_v43  ;;  %v356_v11 = vadd.f32 %v344_v43, %v324_v3 }
 0x12d   : > { %v355_v12 = vadd.f32 %v348_v56, %v323_v6  ;;  %v560_v6 = vld [vmem:[%s4993_s2 + $0x1f8] sm:$0xff] }
 0x12f   : > { %v338_v54 = vpop.permute.xlu1 %337 }
 0x130   : > { %v346_v40 = vsel %vm345_vm4, %v338_v54, %v340_v29  ;;  %v550_v54 = vld [vmem:[%s4993_s2 + $0x1a8] sm:$0xff] }
 0x131   : > { %v353_v0 = vadd.f32 %v346_v40, %v321_v59  ;;  %v3356_v14 = vpack.c.bf16 %v552_v55, %v550_v54  ;;  %v551_v40 = vld [vmem:[%s4993_s2 + $0x1b0] sm:$0xff]  ;;  %v556_v59 = vld [vmem:[%s4993_s2 + $0x1d8] sm:$0xff] }
 0x132   : > { %v3358_v57 = vpack.c.bf16 %v551_v40, %v549_v23  ;;  %v3360_v60 = vpack.c.bf16 %v556_v59, %v554_v58  ;;  %v565_v23 = vld [vmem:[%s4993_s2 + $0x220] sm:$0xff]  ;;  %v567_v40 = vld [vmem:[%s4993_s2 + $0x230] sm:$0xff]  ;;  %v570_v58 = vld [vmem:[%s4993_s2 + $0x248] sm:$0xff] }
 0x133   : > { %v372_v2 = vpop.permute.xlu1 %371  ;;  %3357 = vmatprep.subr.bf16.mxu0 %v3356_v14  ;;  %v572_v59 = vld [vmem:[%s4993_s2 + $0x258] sm:$0xff] }
 0x134   : > { %v379_v4 = vsel %vm377_vm5, %v372_v2, %v374_v44  ;;  %v378_v5 = vsel %vm377_vm5, %v370_v49, %v372_v2  ;;  %3359 = vmatpush1.bf16.msra.mxu0 %v3358_v57  ;;  %v3362_v2 = vpack.c.bf16 %v555_v62, %v553_v61  ;;  %v3376_v61 = vpack.c.bf16 %v572_v59, %v570_v58  ;;  %v569_v62 = vld [vmem:[%s4993_s2 + $0x240] sm:$0xff] }
 0x135   : > { %v386_v8 = vadd.f32 %v379_v4, %v354_v63  ;;  %v385_v9 = vadd.f32 %v378_v5, %v353_v0  ;;  %3361 = vmatprep.subr.bf16.mxu0 %v3360_v60  ;;  %v558_v5 = vld [vmem:[%s4993_s2 + $0x1e8] sm:$0xff]  ;;  %v3374_v60 = vpack.c.bf16 %v567_v40, %v565_v23 }
 0x137   : > { %v396_v10 = vmul.f32 %v4027_v24, %v386_v8  ;;  %v395_v13 = vmul.f32 %v4027_v24, %v385_v9  ;;  %v376_v16 = vpop.permute.xlu1 %375 }
 0x138   : > { %v380_v17 = vsel %vm377_vm5, %v374_v44, %v376_v16  ;;  %v388_v18 = vadd.f32 %v376_v16, %v356_v11  ;;  %3363 = vmatpush1.bf16.msra.mxu0 %v3362_v2  ;;  %v3364_v11 = vpack.c.bf16 %v560_v6, %v558_v5  ;;  %v576_v2 = vld [vmem:[%s4993_s2 + $0x278] sm:$0xff]  ;;  %v575_v5 = vld [vmem:[%s4993_s2 + $0x270] sm:$0xff]  ;;  %v578_v6 = vld [vmem:[%s4993_s2 + $0x288] sm:$0xff] }
 0x139   : > { %v4165_v19 = vadd.f32 %v3999_v7, %v396_v10  ;;  %v4168_v20 = vadd.f32 %v3999_v7, %v395_v13  ;;  %v387_v25 = vadd.f32 %v380_v17, %v355_v12  ;;  %v557_v12 = vld [vmem:[%s4993_s2 + $0x1e0] sm:$0xff]  ;;  %v559_v10 = vld [vmem:[%s4993_s2 + $0x1f0] sm:$0xff] }
 0x13a   : > { %v398_v26 = vmul.f32 %v4027_v24, %v388_v18  ;;  %v3366_v18 = vpack.c.bf16 %v559_v10, %v557_v12  ;;  %3365 = vmatprep.subr.bf16.mxu0 %v3364_v11  ;;  %v577_v12 = vld [vmem:[%s4993_s2 + $0x280] sm:$0xff]  ;;  %v579_v10 = vld [vmem:[%s4993_s2 + $0x290] sm:$0xff] }
 0x13b   : > { %v408_v27 = vmin.f32 %v4165_v19, 20.0  ;;  %v407_v28 = vmin.f32 %v4168_v20, 20.0  ;;  %v397_v29 = vmul.f32 %v4027_v24, %v387_v25  ;;  %vm443_vm6 = vcmp.gt.f32.partialorder %v4168_v20, 20.0 }
 0x13c   : > { %v4175_v30 = vadd.f32 %v3999_v7, %v398_v26  ;;  %3367 = vmatpush1.bf16.msra.mxu0 %v3366_v18  ;;  %vm444_vm7 = vcmp.gt.f32.partialorder %v4165_v19, 20.0 }
 0x13d   : > { %v413_v31 = vmul.f32 1.442695, %v408_v27  ;;  %v411_v34 = vmul.f32 1.442695, %v407_v28  ;;  %v4178_v35 = vadd.f32 %v3999_v7, %v397_v29  ;;  %v562_v29 = vld [vmem:[%s4993_s2 + $0x208] sm:$0xff] }
 0x13e   : > { %v410_v36 = vmin.f32 %v4175_v30, 20.0  ;;  %vm446_vm9 = vcmp.gt.f32.partialorder %v4175_v30, 20.0 }
 0x13f   : > { %3690 = vpow2.f32 %v413_v31  ;;  %v409_v37 = vmin.f32 %v4178_v35, 20.0  ;;  %v564_v31 = vld [vmem:[%s4993_s2 + $0x218] sm:$0xff]  ;;  %vm445_vm8 = vcmp.gt.f32.partialorder %v4178_v35, 20.0 }
 0x140   : > { %v417_v38 = vmul.f32 1.442695, %v410_v36  ;;  %3692 = vpow2.f32 %v411_v34  ;;  %v3368_v36 = vpack.c.bf16 %v564_v31, %v562_v29 }
 0x141   : > { %v415_v39 = vmul.f32 1.442695, %v409_v37 }
 0x142   : > { %3694 = vpow2.f32 %v417_v38  ;;  %3369 = vmatprep.subr.bf16.mxu0 %v3368_v36  ;;  %v587_v36 = vld [vmem:[%s4993_s2 + $0x2d0] sm:$0xff] }
 0x143   : > { %3696 = vpow2.f32 %v415_v39 }
 0x149   : > { %v3691_v42 = vpop.eup %3690 }
 0x14a   : > { %v3693_v24 = vpop.eup %3692  ;;  %v420_v43 = vadd.f32 1.0, %v3691_v42 }
 0x14b   : > { %v419_v44 = vadd.f32 1.0, %v3693_v24 }
 0x14c   : > { %v3695_v33 = vpop.eup %3694  ;;  %v424_v15 = vmul.f32 %v420_v43, %v420_v43 }
 0x14d   : > { %v3697_v22 = vpop.eup %3696  ;;  %v423_v41 = vmul.f32 %v419_v44, %v419_v44  ;;  %v422_v7 = vadd.f32 1.0, %v3695_v33 }
 0x14e   : > { %v421_v45 = vadd.f32 1.0, %v3697_v22  ;;  %v432_v46 = vadd.f32 1.0, %v424_v15  ;;  %v2813_v49 = vadd.f32 -1.0, %v424_v15 }
 0x14f   : > { %v431_v47 = vadd.f32 1.0, %v423_v41  ;;  %v426_v48 = vmul.f32 %v422_v7, %v422_v7  ;;  %v2812_v0 = vadd.f32 -1.0, %v423_v41  ;;  %v561_v7 = vld [vmem:[%s4993_s2 + $0x200] sm:$0xff] }
 0x150   : > { %v425_v21 = vmul.f32 %v421_v45, %v421_v45  ;;  %3698 = vrcp.f32 %v432_v46  ;;  %v563_v45 = vld [vmem:[%s4993_s2 + $0x210] sm:$0xff] }
 0x151   : > { %3700 = vrcp.f32 %v431_v47  ;;  %v434_v50 = vadd.f32 1.0, %v426_v48  ;;  %v2815_v17 = vadd.f32 -1.0, %v426_v48  ;;  %v566_v48 = vld [vmem:[%s4993_s2 + $0x228] sm:$0xff]  ;;  %v3370_v54 = vpack.c.bf16 %v563_v45, %v561_v7  ;;  %v593_v7 = vld [vmem:[%s4993_s2 + $0x300] sm:$0xff] }
 0x152   : > { %v433_v52 = vadd.f32 1.0, %v425_v21  ;;  %v2814_v9 = vadd.f32 -1.0, %v425_v21  ;;  %v568_v21 = vld [vmem:[%s4993_s2 + $0x238] sm:$0xff] }
 0x153   : > { %3702 = vrcp.f32 %v434_v50  ;;  %v3372_v14 = vpack.c.bf16 %v568_v21, %v566_v48 }
 0x154   : > { %3704 = vrcp.f32 %v433_v52 }
 0x15a   : > { %v3699_v63 = vpop.eup %3698 }
 0x15b   : > { %v3701_v3 = vpop.eup %3700  ;;  %v440_v56 = vmul.f32 %v3699_v63, %v2813_v49  ;;  %v571_v63 = vld [vmem:[%s4993_s2 + $0x250] sm:$0xff] }
 0x15c   : > { %v439_v4 = vmul.f32 %v3701_v3, %v2812_v0  ;;  %v574_v0 = vld [vmem:[%s4993_s2 + $0x268] sm:$0xff]  ;;  %v3378_v3 = vpack.c.bf16 %v571_v63, %v569_v62  ;;  %v921_v62 = vld [vmem:[%s4992_s1 + $0x38] sm:$0xff]  ;;  %v922_v63 = vld [vmem:[%s4992_s1 + $0x40] sm:$0xff] }
 0x15d   : > { %v3703_v8 = vpop.eup %3702  ;;  %v448_v26 = vmul.f32 %v440_v56, %v4165_v19  ;;  %v3380_v56 = vpack.c.bf16 %v576_v2, %v574_v0  ;;  %v923_v2 = vld [vmem:[%s4992_s1 + $0x48] sm:$0xff] }
 0x15e   : > { %v3705_v13 = vpop.eup %3704  ;;  %v447_v16 = vmul.f32 %v439_v4, %v4168_v20  ;;  %v442_v28 = vmul.f32 %v3703_v8, %v2815_v17  ;;  %v573_v4 = vld [vmem:[%s4993_s2 + $0x260] sm:$0xff]  ;;  %v580_v8 = vld [vmem:[%s4993_s2 + $0x298] sm:$0xff]  ;;  %v3386_v17 = vpack.c.bf16 %v579_v10, %v577_v12 }
 0x15f   : > { %v441_v25 = vmul.f32 %v3705_v13, %v2814_v9  ;;  %v3382_v9 = vpack.c.bf16 %v575_v5, %v573_v4  ;;  %v3384_v11 = vpack.c.bf16 %v580_v8, %v578_v6  ;;  %v582_v13 = vld [vmem:[%s4993_s2 + $0x2a8] sm:$0xff]  ;;  %v925_v4 = vld [vmem:[%s4992_s1 + $0x58] sm:$0xff]  ;;  %v926_v6 = vld [vmem:[%s4992_s1 + $0x60] sm:$0xff] }
 0x160   : > { %v451_v27 = vsel %vm443_vm6, %v4168_v20, %v447_v16  ;;  %v452_v20 = vsel %vm444_vm7, %v4165_v19, %v448_v26  ;;  %v450_v39 = vmul.f32 %v442_v28, %v4175_v30  ;;  %v584_v16 = vld [vmem:[%s4993_s2 + $0x2b8] sm:$0xff]  ;;  %v583_v26 = vld [vmem:[%s4993_s2 + $0x2b0] sm:$0xff]  ;;  %v927_v8 = vld [vmem:[%s4992_s1 + $0x68] sm:$0xff]  ;;  %vm1275_vm6 = vcmask 1045504  }
 0x161   : > { %459 = vrot.lane.b32.xlu0 %v451_v27, %s3809_s6  ;;  %v449_v34 = vmul.f32 %v441_v25, %v4178_v35  ;;  %v3388_v18 = vpack.c.bf16 %v584_v16, %v582_v13  ;;  %v581_v25 = vld [vmem:[%s4993_s2 + $0x2a0] sm:$0xff]  ;;  %v588_v28 = vld [vmem:[%s4993_s2 + $0x2d8] sm:$0xff]  ;;  %v931_v16 = vld [vmem:[%s4992_s1 + $0x88] sm:$0xff]  ;;  %vm1392_vm7 = vcmask 1044480  }
 0x162   : > { %v454_v42 = vsel %vm446_vm9, %v4175_v30, %v450_v39  ;;  %v3390_v29 = vpack.c.bf16 %v583_v26, %v581_v25  ;;  %v929_v12 = vld [vmem:[%s4992_s1 + $0x78] sm:$0xff]  ;;  %v930_v13 = vld [vmem:[%s4992_s1 + $0x80] sm:$0xff] }
 0x163   : > { %v4240_v37 = vsel %vm445_vm8, %v4178_v35, %v449_v34  ;;  %v585_v34 = vld [vmem:[%s4993_s2 + $0x2c0] sm:$0xff]  ;;  %vm1985_vm8 = vcmask 269312  }
 0x164   : > { %v3668_v38 = vpack.i.bf16 %v4240_v37, %v452_v20  ;;  %v3394_v39 = vpack.c.bf16 %v587_v36, %v585_v34 }
 0x165   : > { %478 = vrot.lane.b32.xlu0 %v451_v27, %s3810_s7 }
 0x166   : > { %3669 = vrot.lane.b32.xlu1 %v3668_v38, %s3809_s6 }
 0x169   : > { %484 = vrot.lane.b32.xlu0 %v454_v42, %s3810_s7 }
 0x16a   : > { %3674 = vrot.lane.b32.xlu1 %v3668_v38, %s3810_s7  ;;  %v592_v38 = vld [vmem:[%s4993_s2 + $0x2f8] sm:$0xff] }
 0x16e   : > { %465 = vrot.lane.b32.xlu1 %v454_v42, %s3809_s6 }
 0x1d3   : > { %v460_v19 = vpop.permute.xlu0 %459 }
 0x1d7   : > { %v479_v30 = vpop.permute.xlu0 %478 }
 0x1d8   : > { %v4251_v35 = vpop.permute.xlu1 %3669 }
 0x1d9   : > { %v3672_v24 = vunpack.i.h.bf16 %v4251_v35  ;;  %v3671_v43 = vunpack.i.l.bf16 %v4251_v35 }
 0x1db   : > { %v467_v44 = vsel %vm217_vm0, %v460_v19, %v3671_v43  ;;  %v468_v33 = vsel %vm217_vm0, %v3671_v43, %v3672_v24  ;;  %v4288_v57 = vpop.permute.xlu0 %484  ;;  %v589_v19 = vld [vmem:[%s4993_s2 + $0x2e0] sm:$0xff]  ;;  %v591_v43 = vld [vmem:[%s4993_s2 + $0x2f0] sm:$0xff] }
 0x1dc   : > { %v4259_v15 = vpop.permute.xlu1 %3674  ;;  %v475_v46 = vmax.f32 %v452_v20, %v468_v33  ;;  %v474_v47 = vmax.f32 %v451_v27, %v467_v44  ;;  %v586_v27 = vld [vmem:[%s4993_s2 + $0x2c8] sm:$0xff]  ;;  %v3398_v33 = vpack.c.bf16 %v591_v43, %v589_v19 }
 0x1dd   : > { %v3677_v22 = vunpack.i.h.bf16 %v4259_v15  ;;  %v3676_v41 = vunpack.i.l.bf16 %v4259_v15  ;;  %v3392_v31 = vpack.c.bf16 %v588_v28, %v586_v27  ;;  %v590_v20 = vld [vmem:[%s4993_s2 + $0x2e8] sm:$0xff]  ;;  %v770_v15 = vld [vmem:[%s4992_s1 + $0x10] sm:$0xff] }
 0x1de   : > { %3024 = vmatprep.mubr.msk.f32.mxu1 %vm772_vm11, %v770_v15  ;;  %v934_v15 = vld [vmem:[%s4992_s1 + $0xa0] sm:$0xff] }
 0x1df   : > { %v487_v50 = vsel %vm249_vm1, %v3676_v41, %v3677_v22  ;;  %v486_v32 = vsel %vm249_vm1, %v479_v30, %v3676_v41  ;;  %v594_v30 = vld [vmem:[%s4993_s2 + $0x308] sm:$0xff]  ;;  %v488_v35 = vsel %vm249_vm1, %v3677_v22, %v4288_v57  ;;  %v854_v22 = vld [vmem:[%s4992_s1 + $0x20] sm:$0xff]  ;;  %vm3817_vm1 = vmmov 0  }
 0x1e0   : > { %v4279_v51 = vpop.permute.xlu1 %465  ;;  %v494_v52 = vmax.f32 %v475_v46, %v487_v50  ;;  %v493_v53 = vmax.f32 %v474_v47, %v486_v32  ;;  %v855_v47 = vld [vmem:[%s4992_s1 + $0x28] sm:$0xff] }
 0x1e1   : > { %v477_v55 = vmax.f32 %v454_v42, %v4279_v51  ;;  %v3396_v42 = vpack.c.bf16 %v592_v38, %v590_v20  ;;  %v469_v44 = vsel %vm217_vm0, %v3672_v24, %v4279_v51 }
 0x1e2   : > { %663 = vmatprep.mubr.f32.mxu0 %v494_v52  ;;  %v476_v41 = vmax.f32 %v4240_v37, %v469_v44 }
 0x1e3   : > { %v496_v49 = vmax.f32 %v477_v55, %v4288_v57  ;;  %664 = vmatmul.mubr.f32.vlgmr.msra.gmra.mrb[0].mxu0 %v493_v53 }
 0x1e4   : > { %3371 = vmatpush1.bf16.msra.mxu0 %v3370_v54  ;;  %v495_v24 = vmax.f32 %v476_v41, %v488_v35 }
 0x1e5   : > { %2816 = vmatprep.mubr.msk.f32.mxu0 %vm595_vm10, %v496_v49  ;;  %3373 = vmatprep.subr.bf16.mxu0 %v3372_v14 }
 0x1e8   : > { %3375 = vmatpush1.bf16.msra.mxu0 %v3374_v60  ;;  %v771_v60 = vld [vmem:[%s4992_s1 + $0x18] sm:$0xff] }
 0x1e9   : > { %3377 = vmatprep.subr.bf16.mxu0 %v3376_v61  ;;  %v920_v61 = vld [vmem:[%s4992_s1 + $0x30] sm:$0xff] }
 0x1ea   : > { %v3412_v0 = vpack.c.bf16 %v921_v62, %v920_v61 }
 0x1ec   : > { %3379 = vmatpush1.bf16.msra.mxu0 %v3378_v3  ;;  %v3416_v3 = vpack.c.bf16 %v923_v2, %v922_v63  ;;  %v1055_v63 = vld [vmem:[%s4992_s1 + $0xc0] sm:$0xff]  ;;  %v3816_v2 = vmov 0.0|0.0  }
 0x1ed   : > { %3381 = vmatprep.subr.bf16.mxu0 %v3380_v56  ;;  %v924_v56 = vld [vmem:[%s4992_s1 + $0x50] sm:$0xff] }
 0x1ee   : > { %v3420_v5 = vpack.c.bf16 %v925_v4, %v924_v56  ;;  %v3818_v56 = vmov 0.0  }
 0x1f0   : > { %3383 = vmatpush1.bf16.msra.mxu0 %v3382_v9  ;;  %v3424_v9 = vpack.c.bf16 %v927_v8, %v926_v6  ;;  %v1054_v6 = vld [vmem:[%s4992_s1 + $0xb8] sm:$0xff] }
 0x1f1   : > { %3385 = vmatprep.subr.bf16.mxu0 %v3384_v11  ;;  %v928_v11 = vld [vmem:[%s4992_s1 + $0x70] sm:$0xff] }
 0x1f2   : > { %v3428_v10 = vpack.c.bf16 %v929_v12, %v928_v11 }
 0x1f4   : > { %3387 = vmatpush1.bf16.msra.mxu0 %v3386_v17  ;;  %v3432_v17 = vpack.c.bf16 %v931_v16, %v930_v13 }
 0x1f5   : > { %3389 = vmatprep.subr.bf16.mxu0 %v3388_v18 }
 0x1f8   : > { %3391 = vmatpush1.bf16.msra.mxu0 %v3390_v29 }
 0x1f9   : > { %3393 = vmatprep.subr.bf16.mxu0 %v3392_v31 }
 0x1fc   : > { %3395 = vmatpush1.bf16.msra.mxu0 %v3394_v39 }
 0x1fd   : > { %3397 = vmatprep.subr.bf16.mxu0 %v3396_v42 }
 0x200   : > { %3399 = vmatpush1.bf16.msra.mxu0 %v3398_v33 }
 0x201   : > { %702 = vmatprep.subr.mxu0 %v594_v30 }
 0x204   : > { %703 = vmatpush1.msra.mxu0 %v593_v7 }
 0x205   : > { %735 = vmatmul.mubr.f32.vlgmr.msra.gmra.mrb[0].mxu0 %v495_v24 }
 0x2d8   : > { %v736_v45 = vpop.f32.mrb[0].mxu0 }
 0x2d9   : > { %745 = vrot.lane.b32.xlu0 %v736_v45, %s3810_s7  ;;  %742 = vrot.lane.b32.xlu1 %v736_v45, %s3809_s6  ;;  %v738_v37 = vpop.f32.mrb[1].mxu0 }
 0x2da   : > { %v3683_v46 = vpack.i.bf16 %v738_v37, %v736_v45 }
 0x2dd   : > { %748 = vrot.lane.b32.xlu1 %v736_v45, %s3811_s8  ;;  %3679 = vrot.lane.b32.xlu0 %v3683_v46, %s3812_s9  ;;  %s3744_s8 = scalar_lea.vmem %s3743_s28, 32 }
 0x2de   : > { %p3746_p1 = scmp.lt.s32.totalorder %s3744_s8, %s3738_s27 }
 0x2e0   : > { %p3747_p2 = por %p3746_p1, %p3745_p0 }
 0x2e1   : > { %3684 = vrot.lane.b32.xlu1 %v3683_v46, %s3813_s10  ;;  %764 = vrot.lane.b32.xlu0 %v736_v45, %s3814_s11 }
 0x2e2   : > { %p3748_p3 = pnand %p3747_p2, %p3741_p13 }
 0x2e5   : > { %766 = vrot.lane.b32.xlu1 %v738_v37, %s3814_s11  ;;  %858 = vperm.xlu0 %3667, %v854_v22   ;;  %v933_v37 = vld [vmem:[%s4992_s1 + $0x98] sm:$0xff] }
 0x2e9   : > { %863 = vperm.xlu1 %3665, %v855_v47   ;;  %3689 = vset.pattern.permute.xlu0 %v3802_v1 }
 0x2ea   : > { %873 = vperm.xlu0 %3689, %v855_v47  }
 0x2ed   : > { %3688 = vset.pattern.permute.xlu1 %v3802_v1 }
 0x2ee   : > { %869 = vperm.xlu1 %3688, %v854_v22   ;;  %v935_v22 = vld [vmem:[%s4992_s1 + $0xa8] sm:$0x7] }
 0x2ef   : > { %v3440_v47 = vpack.c.bf16 %v935_v22, %v934_v15 }
 0x34b   : > { %v746_v48 = vpop.permute.xlu0 %745  ;;  %v743_v21 = vpop.permute.xlu1 %742 }
 0x34c   : > { %v3400_v50 = vpack.c.bf16 %v743_v21, %v736_v45  ;;  %v932_v45 = vld [vmem:[%s4992_s1 + $0x90] sm:$0xff] }
 0x34d   : > { %v3436_v46 = vpack.c.bf16 %v933_v37, %v932_v45 }
 0x34e   : > { %3401 = vmatprep.subr.bf16.mxu1 %v3400_v50 }
 0x34f   : > { %3403 = vmatpush3.bf16.msra.mxu1 %v3400_v50  ;;  %v749_v32 = vpop.permute.xlu1 %748  ;;  %v3680_v51 = vpop.permute.xlu0 %3679 }
 0x350   : > { %v3404_v52 = vpack.c.bf16 %v749_v32, %v746_v48  ;;  %v3682_v53 = vunpack.i.h.bf16 %v3680_v51  ;;  %v3681_v54 = vunpack.i.l.bf16 %v3680_v51 }
 0x352   : > { %3405 = vmatprep.subr.bf16.mxu1 %v3404_v52  ;;  %v756_v40 = vsel %vm313_vm3, %v3681_v54, %v3682_v53  ;;  %vm1072_vm3 = vcmask 130048  }
 0x353   : > { %3407 = vmatpush3.bf16.msra.mxu1 %v3404_v52  ;;  %v3685_v55 = vpop.permute.xlu1 %3684  ;;  %v765_v59 = vpop.permute.xlu0 %764 }
 0x354   : > { %v3687_v14 = vunpack.i.h.bf16 %v3685_v55  ;;  %v3686_v23 = vunpack.i.l.bf16 %v3685_v55 }
 0x356   : > { %v762_v1 = vsel %vm345_vm4, %v3686_v23, %v3687_v14 }
 0x357   : > { %v767_v57 = vpop.permute.xlu1 %766  ;;  %v3408_v58 = vpack.c.bf16 %v762_v1, %v756_v40 }
 0x358   : > { %v768_v49 = vsel %vm377_vm5, %v765_v59, %v767_v57  ;;  %vm1743_vm5 = vcmask 1041408  }
 0x359   : > { %3409 = vmatprep.subr.bf16.mxu1 %v3408_v58 }
 0x35a   : > { %3411 = vmatpush3.bf16.msra.mxu1 %v3408_v58 }
 0x35b   : > { %3022 = vmatprep.subr.mxu1 %v768_v49 }
 0x35e   : > { %3023 = vmatpush3.msra.mxu1 %v768_v49 }
 0x35f   : > { %3025 = vmatmul.mubr.msk.f32.vlgmr.msra.gmra.mrb[0].mxu1 %vm772_vm11, %v771_v60  ;;  %3413 = vmatprep.subr.bf16.mxu1 %v3412_v0 }
 0x360   : > { %3415 = vmatpush3.bf16.msra.mxu1 %v3412_v0  ;;  %v1056_v0 = vld [vmem:[%s4992_s1 + $0xc8] sm:$0xff] }
 0x361   : > { %3417 = vmatprep.subr.bf16.mxu1 %v3416_v3 }
 0x364   : > { %3419 = vmatpush3.bf16.msra.mxu1 %v3416_v3  ;;  %v859_v18 = vpop.permute.xlu0 %858  ;;  %v3447_v3 = vpack.c.bf16 %v1056_v0, %v1055_v63  ;;  %v1507_v63 = vld [vmem:[%s4992_s1 + $0xf0] sm:$0xff]  ;;  %v1508_v0 = vld [vmem:[%s4992_s1 + $0xf8] sm:$0xff] }
 0x365   : > { %3421 = vmatprep.subr.bf16.mxu1 %v3420_v5 }
 0x368   : > { %3423 = vmatpush3.bf16.msra.mxu1 %v3420_v5  ;;  %v864_v25 = vpop.permute.xlu1 %863  ;;  %v1053_v5 = vld [vmem:[%s4992_s1 + $0xb0] sm:$0xff] }
 0x369   : > { %3425 = vmatprep.subr.bf16.mxu1 %v3424_v9  ;;  %v874_v27 = vpop.permute.xlu0 %873 }
 0x36c   : > { %3427 = vmatpush3.bf16.msra.mxu1 %v3424_v9  ;;  %v3450_v9 = vpack.c.bf16 %v1054_v6, %v1053_v5  ;;  %v3459_v6 = vpack.c.bf16 %v1508_v0, %v1507_v63 }
 0x36d   : > { %3429 = vmatprep.subr.bf16.mxu1 %v3428_v10  ;;  %v870_v31 = vpop.permute.xlu1 %869 }
 0x370   : > { %3431 = vmatpush3.bf16.msra.mxu1 %v3428_v10 }
 0x371   : > { %3433 = vmatprep.subr.bf16.mxu1 %v3432_v17 }
 0x374   : > { %3435 = vmatpush3.bf16.msra.mxu1 %v3432_v17 }
 0x375   : > { %3437 = vmatprep.subr.bf16.mxu1 %v3436_v46 }
 0x378   : > { %3439 = vmatpush3.bf16.msra.mxu1 %v3436_v46 }
 0x379   : > { %3442 = vmatprep.subr.msk.bf16.mxu1 %vm3441_vm14, %v3440_v47 }
 0x37c   : > { %3445 = vmatpush3.bf16.msk.msra.mxu1 %vm3441_vm14, %v3440_v47 }
 0x37d   : > { %3446 = vmatprep.subr.bf16.mxu1 %v3816_v2 }
 0x432   : > { %v3026_v26 = vpop.f32.mrb[0].mxu1 }
 0x433   : > { %v867_v28 = vmul.f32 %v3026_v26, %v864_v25  ;;  %v845_v29 = vpop.f32.mrb[1].mxu1 }
 0x434   : > { %v866_v34 = vmul.f32 %v859_v18, %v845_v29 }
 0x435   : > { %v877_v36 = vadd.f32 %v874_v27, %v867_v28 }
 0x436   : > { %v876_v20 = vadd.f32 %v870_v31, %v866_v34 }
 0x437   : > { %v879_v38 = vmin.f32 %v877_v36, 20.0  ;;  %vm897_vm15 = vcmp.gt.f32.partialorder %v877_v36, 20.0 }
 0x438   : > { %v878_v39 = vmin.f32 %v876_v20, 20.0  ;;  %vm896_vm0 = vcmp.gt.f32.partialorder %v876_v20, 20.0 }
 0x439   : > { %v882_v42 = vmul.f32 1.442695, %v879_v38 }
 0x43a   : > { %v880_v19 = vmul.f32 1.442695, %v878_v39 }
 0x43b   : > { %3706 = vpow2.f32 %v882_v42 }
 0x43c   : > { %3708 = vpow2.f32 %v880_v19 }
 0x445   : > { %v3707_v43 = vpop.eup %3706 }
 0x446   : > { %v3709_v44 = vpop.eup %3708  ;;  %v885_v33 = vadd.f32 1.0, %v3707_v43 }
 0x447   : > { %v884_v30 = vadd.f32 1.0, %v3709_v44 }
 0x448   : > { %v887_v41 = vmul.f32 %v885_v33, %v885_v33 }
 0x449   : > { %v886_v7 = vmul.f32 %v884_v30, %v884_v30 }
 0x44a   : > { %v891_v35 = vadd.f32 1.0, %v887_v41  ;;  %v2820_v48 = vadd.f32 -1.0, %v887_v41 }
 0x44b   : > { %v890_v24 = vadd.f32 1.0, %v886_v7  ;;  %v2819_v50 = vadd.f32 -1.0, %v886_v7 }
 0x44c   : > { %3710 = vrcp.f32 %v891_v35 }
 0x44d   : > { %3712 = vrcp.f32 %v890_v24 }
 0x456   : > { %v3711_v21 = vpop.eup %3710 }
 0x457   : > { %v3713_v32 = vpop.eup %3712  ;;  %v895_v51 = vmul.f32 %v3711_v21, %v2820_v48 }
 0x458   : > { %v894_v52 = vmul.f32 %v3713_v32, %v2819_v50 }
 0x459   : > { %v899_v53 = vmul.f32 %v895_v51, %v877_v36 }
 0x45a   : > { %v898_v54 = vmul.f32 %v894_v52, %v876_v20  ;;  %v1273_v52 = vld [vmem:[%s4992_s1 + $0xd0] sm:$0xff] }
 0x45b   : > { %v901_v55 = vsel %vm897_vm15, %v877_v36, %v899_v53  ;;  %v1274_v53 = vld [vmem:[%s4992_s1 + $0xd8] sm:$0xff]  ;;  %vm1992_vm15 = vcmask 1040384  }
 0x45c   : > { %906 = vrot.lane.b32.xlu1 %v901_v55, %s3809_s6  ;;  %v900_v14 = vsel %vm896_vm0, %v876_v20, %v898_v54  ;;  %v3453_v54 = vpack.c.bf16 %v1274_v53, %v1273_v52  ;;  %vm2081_vm0 = vcmask 261120  }
 0x45d   : > { %912 = vrot.lane.b32.xlu0 %v900_v14, %s3810_s7 }
 0x460   : > { %904 = vrot.lane.b32.xlu1 %v900_v14, %s3809_s6 }
 0x464   : > { %914 = vrot.lane.b32.xlu1 %v901_v55, %s3810_s7 }
 0x4ce   : > { %v907_v23 = vpop.permute.xlu1 %906 }
 0x4cf   : > { %v913_v57 = vpop.permute.xlu0 %912  ;;  %v911_v58 = vmax.f32 %v901_v55, %v907_v23  ;;  %v1390_v55 = vld [vmem:[%s4992_s1 + $0xe0] sm:$0xff] }
 0x4d2   : > { %v905_v40 = vpop.permute.xlu1 %904 }
 0x4d3   : > { %v910_v1 = vmax.f32 %v900_v14, %v905_v40  ;;  %v1391_v14 = vld [vmem:[%s4992_s1 + $0xe8] sm:$0xff] }
 0x4d5   : > { %v918_v59 = vmax.f32 %v910_v1, %v913_v57  ;;  %v3456_v1 = vpack.c.bf16 %v1391_v14, %v1390_v55 }
 0x4d6   : > { %v915_v49 = vpop.permute.xlu1 %914 }
 0x4d7   : > { %v919_v60 = vmax.f32 %v911_v58, %v915_v49  ;;  %3059 = vmatprep.mubr.msk.f32.mxu1 %vm345_vm4, %v918_v59 }
 0x4d9   : > { %3060 = vmatmul.mubr.msk.f32.vlgmr.msra.gmra.mrb[2].mxu1 %vm345_vm4, %v919_v60  ;;  %vm1509_vm4 = vcmask 1043456  }
 0x4da   : > { %3448 = vmatpush3.bf16.msra.mxu1 %v3447_v3  ;;  %3066 = vmatprep.mubr.msk.f32.mxu1 %vm3817_vm1, %v3818_v56 }
 0x4db   : > { %3449 = vmatprep.subr.bf16.mxu1 %v3816_v2 }
 0x5ac   : > { %v3061_v61 = vpop.f32.mrb[2].mxu1 }
 0x5ad   : > { %v1012_v62 = vpop.f32.mrb[3].mxu1 }
 0x5ae   : > { %1021 = vxpose.xlu0.b32.start [1/2] (short) (narrow) %v1012_v62, 48 }
 0x5b2   : > { %1022 = vxpose.xlu0.b32.end [2/2] (short) (narrow) %v3061_v61, 48 }
 0x62e   : > { %v4469_v4 = vpop.trf.xlu0 }
 0x62f   : > { %v1063_v11 = vrot.slane %v4469_v4, 1  ;;  %v1510_v10 = vrot.slane %v4469_v4, 4  ;;  %v1626_v16 = vrot.slane %v4469_v4, 5  ;;  %v1744_v18 = vrot.slane %v4469_v4, 6 }
 0x630   : > { %v1276_v40 = vrot.slane %v4469_v4, 2  ;;  %v1393_v5 = vrot.slane %v4469_v4, 3 }
 0x632   : > { %v4477_v8 = vpop.trf.xlu0 }
 0x633   : > { %v1064_v12 = vrot.slane %v4477_v8, 1  ;;  %v1511_v13 = vrot.slane %v4477_v8, 4  ;;  %v1627_v17 = vrot.slane %v4477_v8, 5  ;;  %v1745_v25 = vrot.slane %v4477_v8, 6 }
 0x634   : > { %v1277_v23 = vrot.slane %v4477_v8, 2  ;;  %v1394_v3 = vrot.slane %v4477_v8, 3 }
 0x635   : > { %v1065_v26 = vsel %vm1062_vm2, %v1063_v11, %v1064_v12  ;;  %v4489_v27 = vsel %vm1509_vm4, %v1510_v10, %v1511_v13  ;;  %v4495_v29 = vsel %vm942_vm12, %v1626_v16, %v1627_v17  ;;  %v4498_v31 = vsel %vm1743_vm5, %v1744_v18, %v1745_v25  ;;  %v1624_v16 = vld [vmem:[%s4992_s1 + $0x100] sm:$0xff] }
 0x636   : > { %3067 = vmatmul.mubr.msk.f32.vlgmr.msra.gmra.mrb[4].mxu1 %vm1072_vm3, %v1065_v26  ;;  %v4492_v28 = vpop.trf.xlu0  ;;  %v1278_v57 = vsel %vm1275_vm6, %v1276_v40, %v1277_v23  ;;  %v1741_v26 = vld [vmem:[%s4992_s1 + $0x118] sm:$0xff] }
 0x637   : > { %3451 = vmatpush3.bf16.msra.mxu1 %v3450_v9  ;;  %3069 = vmatprep.mubr.msk.f32.mxu1 %vm3817_vm1, %v3818_v56  ;;  %v1066_v34 = vrot.slane %v4492_v28, 1  ;;  %v1513_v36 = vrot.slane %v4492_v28, 4  ;;  %v1629_v20 = vrot.slane %v4492_v28, 5  ;;  %v1747_v38 = vrot.slane %v4492_v28, 6 }
 0x638   : > { %3452 = vmatprep.subr.bf16.mxu1 %v3816_v2  ;;  %v1279_v58 = vrot.slane %v4492_v28, 2  ;;  %v1395_v9 = vsel %vm1392_vm7, %v1393_v5, %v1394_v3  ;;  %v1396_v11 = vrot.slane %v4492_v28, 3 }
 0x639   : > { %v1067_v39 = vsel %vm1062_vm2, %v1064_v12, %v1066_v34  ;;  %v4509_v42 = vsel %vm1509_vm4, %v1511_v13, %v1513_v36  ;;  %v4515_v43 = vsel %vm942_vm12, %v1627_v17, %v1629_v20  ;;  %v4518_v44 = vsel %vm1743_vm5, %v1745_v25, %v1747_v38  ;;  %v1625_v17 = vld [vmem:[%s4992_s1 + $0x108] sm:$0xff]  ;;  %v1740_v25 = vld [vmem:[%s4992_s1 + $0x110] sm:$0xff] }
 0x63a   : > { %3070 = vmatmul.mubr.msk.f32.gmra.mrb[6].mxu1 %vm1072_vm3, %v1067_v39  ;;  %v4512_v19 = vpop.trf.xlu0  ;;  %v1280_v59 = vsel %vm1275_vm6, %v1277_v23, %v1279_v58  ;;  %v3462_v18 = vpack.c.bf16 %v1625_v17, %v1624_v16 }
 0x63b   : > { %3072 = vmatprep.mubr.msk.f32.mxu1 %vm3817_vm1, %v3818_v56  ;;  %v1068_v33 = vrot.slane %v4512_v19, 1  ;;  %v1515_v30 = vrot.slane %v4512_v19, 4  ;;  %v1631_v41 = vrot.slane %v4512_v19, 5  ;;  %v1749_v7 = vrot.slane %v4512_v19, 6 }
 0x63c   : > { %v1281_v49 = vrot.slane %v4512_v19, 2  ;;  %v1398_v12 = vrot.slane %v4512_v19, 3 }
 0x63d   : > { %v1069_v35 = vsel %vm1062_vm2, %v1066_v34, %v1068_v33  ;;  %v4528_v24 = vsel %vm1509_vm4, %v1513_v36, %v1515_v30  ;;  %v4534_v37 = vsel %vm942_vm12, %v1629_v20, %v1631_v41  ;;  %v4537_v46 = vsel %vm1743_vm5, %v1747_v38, %v1749_v7  ;;  %v1983_v34 = vld [vmem:[%s4992_s1 + $0x128] sm:$0xff]  ;;  %v2859_v36 = vld [vmem:[%s4992_s1 + $0x120] ss:$0 sm:$0xff]  ;;  %v2860_v38 = vld [vmem:[%s4992_s1 + $0x121] ss:$0 sm:$0xff] }
 0x63e   : > { %3073 = vmatmul.mubr.msk.f32.gmra.mrb[8].mxu1 %vm1072_vm3, %v1069_v35  ;;  %v4531_v45 = vpop.trf.xlu0  ;;  %v1282_v60 = vsel %vm1275_vm6, %v1279_v58, %v1281_v49  ;;  %3205 = vmatprep.mubr.msk.f32.mxu0 %vm1985_vm8, %v1983_v34 }
 0x63f   : > { %3075 = vmatprep.mubr.msk.f32.mxu1 %vm3817_vm1, %v3818_v56  ;;  %v1070_v15 = vrot.slane %v4531_v45, 1  ;;  %v1517_v22 = vrot.slane %v4531_v45, 4  ;;  %v1633_v47 = vrot.slane %v4531_v45, 5  ;;  %v1751_v48 = vrot.slane %v4531_v45, 6 }
 0x640   : > { %v1283_v61 = vrot.slane %v4531_v45, 2  ;;  %v1400_v10 = vrot.slane %v4531_v45, 3 }
 0x641   : > { %v1071_v21 = vsel %vm1062_vm2, %v1068_v33, %v1070_v15  ;;  %v4549_v50 = vsel %vm1509_vm4, %v1515_v30, %v1517_v22  ;;  %v4555_v32 = vsel %vm942_vm12, %v1631_v41, %v1633_v47  ;;  %v4560_v51 = vsel %vm1743_vm5, %v1749_v7, %v1751_v48 }
 0x642   : > { %3076 = vmatmul.mubr.msk.f32.gmra.mrb[10].mxu1 %vm1072_vm3, %v1071_v21  ;;  %v1284_v62 = vsel %vm1275_vm6, %v1281_v49, %v1283_v61  ;;  %v1401_v13 = vsel %vm1392_vm7, %v1398_v12, %v1400_v10 }
 0x643   : > { %3078 = vmatprep.mubr.msk.f32.mxu1 %vm3817_vm1, %v3818_v56 }
 0x646   : > { %3079 = vmatmul.mubr.msk.f32.gmra.mrb[12].mxu1 %vm1072_vm3, %v1070_v15 }
 0x647   : > { %3085 = vmatprep.mubr.msk.f32.mxu1 %vm3817_vm1, %v3818_v56 }
 0x64a   : > { %3086 = vmatmul.mubr.msk.f32.vlgmr.msra.gmra.mrb[4].mxu1 %vm1072_vm3, %v4469_v4  ;;  %v1399_v4 = vsel %vm1392_vm7, %v1396_v11, %v1398_v12 }
 0x64b   : > { %3454 = vmatpush3.bf16.msra.mxu1 %v3453_v54  ;;  %3088 = vmatprep.mubr.msk.f32.mxu1 %vm3817_vm1, %v3818_v56 }
 0x64c   : > { %3455 = vmatprep.subr.bf16.mxu1 %v3816_v2 }
 0x64e   : > { %3089 = vmatmul.mubr.msk.f32.gmra.mrb[6].mxu1 %vm1072_vm3, %v4477_v8  ;;  %v1397_v8 = vsel %vm1392_vm7, %v1394_v3, %v1396_v11 }
 0x64f   : > { %3091 = vmatprep.mubr.msk.f32.mxu1 %vm3817_vm1, %v3818_v56 }
 0x652   : > { %3092 = vmatmul.mubr.msk.f32.gmra.mrb[8].mxu1 %vm1072_vm3, %v4492_v28  ;;  %v1042_v28 = vpop.trf.xlu0 }
 0x653   : > { %3094 = vmatprep.mubr.msk.f32.mxu1 %vm3817_vm1, %v3818_v56 }
 0x656   : > { %3095 = vmatmul.mubr.msk.f32.gmra.mrb[10].mxu1 %vm1072_vm3, %v4512_v19 }
 0x657   : > { %3097 = vmatprep.mubr.msk.f32.mxu1 %vm3817_vm1, %v3818_v56 }
 0x65a   : > { %3098 = vmatmul.mubr.msk.f32.gmra.mrb[12].mxu1 %vm1072_vm3, %v4531_v45 }
 0x65b   : > { %3104 = vmatprep.mubr.msk.f32.mxu1 %vm3817_vm1, %v3818_v56 }
 0x65e   : > { %3105 = vmatmul.mubr.msk.f32.vlgmr.msra.gmra.mrb[4].mxu1 %vm1072_vm3, %v1278_v57 }
 0x65f   : > { %3457 = vmatpush3.bf16.msra.mxu1 %v3456_v1  ;;  %3107 = vmatprep.mubr.msk.f32.mxu1 %vm3817_vm1, %v3818_v56 }
 0x660   : > { %3458 = vmatprep.subr.bf16.mxu1 %v3816_v2 }
 0x662   : > { %3108 = vmatmul.mubr.msk.f32.gmra.mrb[6].mxu1 %vm1072_vm3, %v1280_v59 }
 0x663   : > { %3110 = vmatprep.mubr.msk.f32.mxu1 %vm3817_vm1, %v3818_v56 }
 0x666   : > { %3111 = vmatmul.mubr.msk.f32.gmra.mrb[8].mxu1 %vm1072_vm3, %v1282_v60 }
 0x667   : > { %3113 = vmatprep.mubr.msk.f32.mxu1 %vm3817_vm1, %v3818_v56 }
 0x66a   : > { %3114 = vmatmul.mubr.msk.f32.gmra.mrb[10].mxu1 %vm1072_vm3, %v1284_v62 }
 0x66b   : > { %3116 = vmatprep.mubr.msk.f32.mxu1 %vm3817_vm1, %v3818_v56 }
 0x66e   : > { %3117 = vmatmul.mubr.msk.f32.gmra.mrb[12].mxu1 %vm1072_vm3, %v1283_v61 }
 0x66f   : > { %3123 = vmatprep.mubr.msk.f32.mxu1 %vm3817_vm1, %v3818_v56 }
 0x672   : > { %3124 = vmatmul.mubr.msk.f32.vlgmr.msra.gmra.mrb[4].mxu1 %vm1072_vm3, %v1395_v9 }
 0x673   : > { %3460 = vmatpush3.bf16.msra.mxu1 %v3459_v6  ;;  %3126 = vmatprep.mubr.msk.f32.mxu1 %vm3817_vm1, %v3818_v56 }
 0x674   : > { %3461 = vmatprep.subr.bf16.mxu1 %v3816_v2 }
 0x676   : > { %3127 = vmatmul.mubr.msk.f32.gmra.mrb[6].mxu1 %vm1072_vm3, %v1397_v8 }
 0x677   : > { %3129 = vmatprep.mubr.msk.f32.mxu1 %vm3817_vm1, %v3818_v56 }
 0x67a   : > { %3130 = vmatmul.mubr.msk.f32.gmra.mrb[8].mxu1 %vm1072_vm3, %v1399_v4 }
 0x67b   : > { %3132 = vmatprep.mubr.msk.f32.mxu1 %vm3817_vm1, %v3818_v56 }
 0x67e   : > { %3133 = vmatmul.mubr.msk.f32.gmra.mrb[10].mxu1 %vm1072_vm3, %v1401_v13 }
 0x67f   : > { %3135 = vmatprep.mubr.msk.f32.mxu1 %vm3817_vm1, %v3818_v56 }
 0x682   : > { %3136 = vmatmul.mubr.msk.f32.gmra.mrb[12].mxu1 %vm1072_vm3, %v1400_v10 }
 0x683   : > { %3142 = vmatprep.mubr.msk.f32.mxu1 %vm3817_vm1, %v3818_v56 }
 0x686   : > { %3143 = vmatmul.mubr.msk.f32.vlgmr.msra.gmra.mrb[4].mxu1 %vm1072_vm3, %v4489_v27  ;;  %v3465_v27 = vpack.c.bf16 %v1741_v26, %v1740_v25 }
 0x687   : > { %3463 = vmatpush3.bf16.msra.mxu1 %v3462_v18  ;;  %3145 = vmatprep.mubr.msk.f32.mxu1 %vm3817_vm1, %v3818_v56 }
 0x688   : > { %3464 = vmatprep.subr.bf16.mxu1 %v3816_v2 }
 0x68a   : > { %3146 = vmatmul.mubr.msk.f32.gmra.mrb[6].mxu1 %vm1072_vm3, %v4509_v42 }
 0x68b   : > { %3148 = vmatprep.mubr.msk.f32.mxu1 %vm3817_vm1, %v3818_v56 }
 0x68e   : > { %3149 = vmatmul.mubr.msk.f32.gmra.mrb[8].mxu1 %vm1072_vm3, %v4528_v24 }
 0x68f   : > { %3151 = vmatprep.mubr.msk.f32.mxu1 %vm3817_vm1, %v3818_v56 }
 0x692   : > { %3152 = vmatmul.mubr.msk.f32.gmra.mrb[10].mxu1 %vm1072_vm3, %v4549_v50 }
 0x693   : > { %3154 = vmatprep.mubr.msk.f32.mxu1 %vm3817_vm1, %v3818_v56 }
 0x696   : > { %3155 = vmatmul.mubr.msk.f32.gmra.mrb[12].mxu1 %vm1072_vm3, %v1517_v22 }
 0x697   : > { %3161 = vmatprep.mubr.msk.f32.mxu1 %vm3817_vm1, %v3818_v56 }
 0x69a   : > { %3162 = vmatmul.mubr.msk.f32.vlgmr.msra.gmra.mrb[4].mxu1 %vm1072_vm3, %v4495_v29  ;;  %v1753_v29 = vrot.slane %v1042_v28, 6 }
 0x69b   : > { %3466 = vmatpush3.bf16.msra.mxu1 %v3465_v27  ;;  %3164 = vmatprep.mubr.msk.f32.mxu1 %vm3817_vm1, %v3818_v56 }
 0x69e   : > { %3165 = vmatmul.mubr.msk.f32.gmra.mrb[6].mxu1 %vm1072_vm3, %v4515_v43 }
 0x69f   : > { %3167 = vmatprep.mubr.msk.f32.mxu1 %vm3817_vm1, %v3818_v56 }
 0x6a2   : > { %3168 = vmatmul.mubr.msk.f32.gmra.mrb[8].mxu1 %vm1072_vm3, %v4534_v37 }
 0x6a3   : > { %3170 = vmatprep.mubr.msk.f32.mxu1 %vm3817_vm1, %v3818_v56 }
 0x6a6   : > { %3171 = vmatmul.mubr.msk.f32.gmra.mrb[10].mxu1 %vm1072_vm3, %v4555_v32 }
 0x6a7   : > { %3173 = vmatprep.mubr.msk.f32.mxu1 %vm3817_vm1, %v3818_v56 }
 0x6aa   : > { %3174 = vmatmul.mubr.msk.f32.gmra.mrb[12].mxu1 %vm1072_vm3, %v1633_v47 }
 0x6ab   : > { %3180 = vmatprep.mubr.msk.f32.mxu1 %vm3817_vm1, %v3818_v56 }
 0x6ae   : > { %3181 = vmatmul.mubr.msk.f32.vlgmr.msra.gmra.mrb[4].mxu1 %vm1072_vm3, %v4498_v31  ;;  %v1754_v31 = vsel %vm1743_vm5, %v1751_v48, %v1753_v29 }
 0x6af   : > { %3183 = vmatprep.mubr.msk.f32.mxu1 %vm3817_vm1, %v3818_v56 }
 0x6b2   : > { %3184 = vmatmul.mubr.msk.f32.gmra.mrb[6].mxu1 %vm1072_vm3, %v4518_v44 }
 0x6b3   : > { %3186 = vmatprep.mubr.msk.f32.mxu1 %vm3817_vm1, %v3818_v56 }
 0x6b6   : > { %3187 = vmatmul.mubr.msk.f32.gmra.mrb[8].mxu1 %vm1072_vm3, %v4537_v46 }
 0x6b7   : > { %3189 = vmatprep.mubr.msk.f32.mxu1 %vm3817_vm1, %v3818_v56 }
 0x6ba   : > { %3190 = vmatmul.mubr.msk.f32.gmra.mrb[10].mxu1 %vm1072_vm3, %v4560_v51 }
 0x6bb   : > { %3192 = vmatprep.mubr.msk.f32.mxu1 %vm3817_vm1, %v3818_v56 }
 0x6be   : > { %3193 = vmatmul.mubr.msk.f32.gmra.mrb[12].mxu1 %vm1072_vm3, %v1754_v31  ;;  %vm2737_vm3 = vcmask 32768  }
 0x781   : > { %v1831_v20 = vpop.f32.mrb[4].mxu1 }
 0x782   : > { %v1866_v39 = vmul.f32 %v2859_v36, %v1831_v20  ;;  %v3182_v42 = vpop.f32.mrb[5].mxu1 }
 0x784   : > { %v4741_v19 = vadd.f32 %v2860_v38, %v1866_v39 }
 0x785   : > { %v1836_v43 = vpop.f32.mrb[6].mxu1 }
 0x786   : > { %v1880_v44 = vmin.f32 %v4741_v19, 20.0  ;;  %v1867_v33 = vmul.f32 %v2859_v36, %v1836_v43  ;;  %v3185_v30 = vpop.f32.mrb[7].mxu1  ;;  %vm1925_vm9 = vcmp.gt.f32.partialorder %v4741_v19, 20.0 }
 0x788   : > { %v1885_v41 = vmul.f32 1.442695, %v1880_v44  ;;  %v4744_v7 = vadd.f32 %v2860_v38, %v1867_v33 }
 0x789   : > { %v1841_v35 = vpop.f32.mrb[8].mxu1 }
 0x78a   : > { %3714 = vpow2.f32 %v1885_v41  ;;  %v1881_v24 = vmin.f32 %v4744_v7, 20.0  ;;  %v1868_v45 = vmul.f32 %v2859_v36, %v1841_v35  ;;  %v3188_v37 = vpop.f32.mrb[9].mxu1  ;;  %vm1926_vm10 = vcmp.gt.f32.partialorder %v4744_v7, 20.0 }
 0x78c   : > { %v1887_v46 = vmul.f32 1.442695, %v1881_v24  ;;  %v4747_v15 = vadd.f32 %v2860_v38, %v1868_v45 }
 0x78d   : > { %v1846_v22 = vpop.f32.mrb[10].mxu1 }
 0x78e   : > { %3716 = vpow2.f32 %v1887_v46  ;;  %v1882_v47 = vmin.f32 %v4747_v15, 20.0  ;;  %v1869_v48 = vmul.f32 %v2859_v36, %v1846_v22  ;;  %v3191_v21 = vpop.f32.mrb[11].mxu1  ;;  %vm1927_vm11 = vcmp.gt.f32.partialorder %v4747_v15, 20.0 }
 0x790   : > { %v1889_v50 = vmul.f32 1.442695, %v1882_v47  ;;  %v4750_v32 = vadd.f32 %v2860_v38, %v1869_v48 }
 0x791   : > { %v1851_v51 = vpop.f32.mrb[12].mxu1 }
 0x792   : > { %3718 = vpow2.f32 %v1889_v50  ;;  %v1883_v52 = vmin.f32 %v4750_v32, 20.0  ;;  %v1870_v53 = vmul.f32 %v2859_v36, %v1851_v51  ;;  %v3194_v54 = vpop.f32.mrb[13].mxu1  ;;  %vm1928_vm13 = vcmp.gt.f32.partialorder %v4750_v32, 20.0 }
 0x794   : > { %v3715_v55 = vpop.eup %3714  ;;  %v1891_v14 = vmul.f32 1.442695, %v1883_v52  ;;  %v4753_v23 = vadd.f32 %v2860_v38, %v1870_v53 }
 0x795   : > { %v1895_v40 = vadd.f32 1.0, %v3715_v55 }
 0x796   : > { %3720 = vpow2.f32 %v1891_v14  ;;  %v1884_v1 = vmin.f32 %v4753_v23, 20.0  ;;  %vm1929_vm14 = vcmp.gt.f32.partialorder %v4753_v23, 20.0 }
 0x797   : > { %v1900_v57 = vmul.f32 %v1895_v40, %v1895_v40 }
 0x798   : > { %v3717_v58 = vpop.eup %3716  ;;  %v1893_v59 = vmul.f32 1.442695, %v1884_v1 }
 0x799   : > { %v1910_v49 = vadd.f32 1.0, %v1900_v57  ;;  %v1896_v60 = vadd.f32 1.0, %v3717_v58  ;;  %v2861_v12 = vadd.f32 -1.0, %v1900_v57 }
 0x79a   : > { %3722 = vpow2.f32 %v1893_v59 }
 0x79b   : > { %3724 = vrcp.f32 %v1910_v49  ;;  %v1901_v61 = vmul.f32 %v1896_v60, %v1896_v60 }
 0x79c   : > { %v3719_v62 = vpop.eup %3718 }
 0x79d   : > { %v1911_v63 = vadd.f32 1.0, %v1901_v61  ;;  %v1897_v0 = vadd.f32 1.0, %v3719_v62  ;;  %v2862_v25 = vadd.f32 -1.0, %v1901_v61 }
 0x79f   : > { %3726 = vrcp.f32 %v1911_v63  ;;  %v1902_v3 = vmul.f32 %v1897_v0, %v1897_v0 }
 0x7a0   : > { %v3721_v5 = vpop.eup %3720 }
 0x7a1   : > { %v1912_v6 = vadd.f32 1.0, %v1902_v3  ;;  %v1898_v9 = vadd.f32 1.0, %v3721_v5  ;;  %v2863_v31 = vadd.f32 -1.0, %v1902_v3 }
 0x7a3   : > { %3728 = vrcp.f32 %v1912_v6  ;;  %v1903_v11 = vmul.f32 %v1898_v9, %v1898_v9 }
 0x7a4   : > { %v3723_v8 = vpop.eup %3722 }
 0x7a5   : > { %v3725_v4 = vpop.eup %3724  ;;  %v1913_v10 = vadd.f32 1.0, %v1903_v11  ;;  %v1899_v13 = vadd.f32 1.0, %v3723_v8  ;;  %v2864_v30 = vadd.f32 -1.0, %v1903_v11  ;;  %v2076_v11 = vld [vmem:[%s4992_s1 + $0x160] sm:$0xff]  ;;  %v1984_v8 = vld [vmem:[%s4992_s1 + $0x130] sm:$0x7] }
 0x7a6   : > { %v1920_v16 = vmul.f32 %v3725_v4, %v2861_v12  ;;  %v2077_v4 = vld [vmem:[%s4992_s1 + $0x168] sm:$0xff] }
 0x7a7   : > { %3730 = vrcp.f32 %v1913_v10  ;;  %v1904_v17 = vmul.f32 %v1899_v13, %v1899_v13  ;;  %v2078_v10 = vld [vmem:[%s4992_s1 + $0x170] sm:$0xff] }
 0x7a8   : > { %v1930_v18 = vmul.f32 %v1920_v16, %v4741_v19  ;;  %v3479_v13 = vpack.c.bf16 %v2078_v10, %v2077_v4  ;;  %v2071_v16 = vld [vmem:[%s4992_s1 + $0x138] sm:$0xff] }
 0x7a9   : > { %v3727_v26 = vpop.eup %3726  ;;  %v1914_v27 = vadd.f32 1.0, %v1904_v17  ;;  %v2865_v47 = vadd.f32 -1.0, %v1904_v17  ;;  %v2072_v17 = vld [vmem:[%s4992_s1 + $0x140] sm:$0xff]  ;;  %v2662_v4 = vld [vmem:[%s4992_s1 + $0x258] sm:$0xff] }
 0x7aa   : > { %v1921_v28 = vmul.f32 %v3727_v26, %v2862_v25  ;;  %v1935_v34 = vsel %vm1925_vm9, %v4741_v19, %v1930_v18 }
 0x7ab   : > { %3732 = vrcp.f32 %v1914_v27  ;;  %v1945_v39 = vrot.slane %v1935_v34, 1  ;;  %v1964_v43 = vrot.slane %v1935_v34, 2 }
 0x7ac   : > { %v1931_v29 = vmul.f32 %v1921_v28, %v4744_v7 }
 0x7ad   : > { %v3729_v36 = vpop.eup %3728 }
 0x7ae   : > { %v1922_v20 = vmul.f32 %v3729_v36, %v2863_v31  ;;  %v1936_v38 = vsel %vm1926_vm10, %v4744_v7, %v1931_v29  ;;  %v3482_v29 = vpack.c.bf16 %v2072_v17, %v2071_v16  ;;  %v2074_v36 = vld [vmem:[%s4992_s1 + $0x150] sm:$0xff]  ;;  %v2877_v17 = vld [vmem:[%s4992_s1 + $0x219] ss:$0 sm:$0xff] }
 0x7af   : > { %v1946_v42 = vrot.slane %v1936_v38, 1  ;;  %v1965_v44 = vrot.slane %v1936_v38, 2 }
 0x7b0   : > { %v1932_v33 = vmul.f32 %v1922_v20, %v4747_v15 }
 0x7b1   : > { %v3731_v41 = vpop.eup %3730  ;;  %v1947_v35 = vsel %vm1062_vm2, %v1945_v39, %v1946_v42  ;;  %v1966_v19 = vsel %vm1275_vm6, %v1964_v43, %v1965_v44 }
 0x7b2   : > { %v1937_v24 = vsel %vm1927_vm11, %v4747_v15, %v1932_v33  ;;  %v1923_v45 = vmul.f32 %v3731_v41, %v2864_v30  ;;  %v1959_v37 = vmax.f32 %v1935_v34, %v1947_v35  ;;  %v2073_v34 = vld [vmem:[%s4992_s1 + $0x148] sm:$0xff]  ;;  %v2226_v30 = vld [vmem:[%s4992_s1 + $0x178] sm:$0xff]  ;;  %v2227_v41 = vld [vmem:[%s4992_s1 + $0x180] sm:$0xff] }
 0x7b3   : > { %v1948_v46 = vrot.slane %v1937_v24, 1  ;;  %v1967_v7 = vrot.slane %v1937_v24, 2  ;;  %v3485_v43 = vpack.c.bf16 %v2074_v36, %v2073_v34  ;;  %v3488_v35 = vpack.c.bf16 %v2227_v41, %v2226_v30 }
 0x7b4   : > { %v1933_v22 = vmul.f32 %v1923_v45, %v4750_v32  ;;  %v1978_v48 = vmax.f32 %v1959_v37, %v1966_v19  ;;  %v2228_v19 = vld [vmem:[%s4992_s1 + $0x188] sm:$0xff]  ;;  %v2304_v37 = vld [vmem:[%s4992_s1 + $0x198] sm:$0xff] }
 0x7b5   : > { %v3733_v21 = vpop.eup %3732  ;;  %v1949_v50 = vsel %vm1062_vm2, %v1946_v42, %v1948_v46  ;;  %v1968_v51 = vsel %vm1275_vm6, %v1965_v44, %v1967_v7 }
 0x7b6   : > { %v1924_v52 = vmul.f32 %v3733_v21, %v2865_v47  ;;  %v1960_v53 = vmax.f32 %v1936_v38, %v1949_v50  ;;  %v1938_v54 = vsel %vm1928_vm13, %v4750_v32, %v1933_v22  ;;  %v2306_v47 = vld [vmem:[%s4992_s1 + $0x1a8] sm:$0xff]  ;;  %v2382_v50 = vld [vmem:[%s4992_s1 + $0x1b8] sm:$0xff] }
 0x7b7   : > { %v1950_v15 = vrot.slane %v1938_v54, 1  ;;  %v1969_v55 = vrot.slane %v1938_v54, 2 }
 0x7b8   : > { %v1934_v14 = vmul.f32 %v1924_v52, %v4753_v23  ;;  %v1979_v40 = vmax.f32 %v1960_v53, %v1968_v51  ;;  %v2383_v51 = vld [vmem:[%s4992_s1 + $0x1c0] sm:$0xff] }
 0x7b9   : > { %v1951_v1 = vsel %vm1062_vm2, %v1948_v46, %v1950_v15  ;;  %v1970_v57 = vsel %vm1275_vm6, %v1967_v7, %v1969_v55  ;;  %v2305_v46 = vld [vmem:[%s4992_s1 + $0x1a0] sm:$0xff]  ;;  %v3500_v52 = vpack.c.bf16 %v2383_v51, %v2382_v50 }
 0x7ba   : > { %v1939_v58 = vsel %vm1929_vm14, %v4753_v23, %v1934_v14  ;;  %v3467_v59 = vpack.c.bf16 %v1979_v40, %v1978_v48  ;;  %v1961_v49 = vmax.f32 %v1937_v24, %v1951_v1  ;;  %v2075_v23 = vld [vmem:[%s4992_s1 + $0x158] sm:$0xff]  ;;  %v2229_v24 = vld [vmem:[%s4992_s1 + $0x190] sm:$0xff]  ;;  %v3494_v7 = vpack.c.bf16 %v2305_v46, %v2304_v37  ;;  %v2464_v40 = vld [vmem:[%s4992_s1 + $0x1e0] sm:$0xff] }
 0x7bb   : > { %v1952_v60 = vrot.slane %v1939_v58, 1  ;;  %v1971_v61 = vrot.slane %v1939_v58, 2  ;;  %v3476_v12 = vpack.c.bf16 %v2076_v11, %v2075_v23  ;;  %v3491_v45 = vpack.c.bf16 %v2229_v24, %v2228_v19  ;;  %v2307_v48 = vld [vmem:[%s4992_s1 + $0x1b0] sm:$0xff]  ;;  %v2463_v14 = vld [vmem:[%s4992_s1 + $0x1d8] sm:$0xff]  ;;  %v2659_v23 = vld [vmem:[%s4992_s1 + $0x240] sm:$0xff] }
 0x7bc   : > { %3468 = vmatprep.subr.bf16.mxu0 %v3467_v59  ;;  %v1980_v62 = vmax.f32 %v1961_v49, %v1970_v57  ;;  %v3497_v21 = vpack.c.bf16 %v2307_v48, %v2306_v47  ;;  %v3506_v1 = vpack.c.bf16 %v2464_v40, %v2463_v14  ;;  %v2465_v57 = vld [vmem:[%s4992_s1 + $0x1e8] sm:$0xff]  ;;  %v2543_v49 = vld [vmem:[%s4992_s1 + $0x1f8] sm:$0xff] }
 0x7bd   : > { %3470 = vmatpush3.bf16.msra.mxu0 %v3467_v59  ;;  %v1953_v32 = vsel %vm1062_vm2, %v1950_v15, %v1952_v60  ;;  %v1972_v63 = vsel %vm1275_vm6, %v1969_v55, %v1971_v61  ;;  %v1963_v5 = vmax.f32 %v1939_v58, %v1952_v60  ;;  %v2385_v15 = vld [vmem:[%s4992_s1 + $0x1d0] sm:$0xff]  ;;  %v2544_v60 = vld [vmem:[%s4992_s1 + $0x200] sm:$0xff]  ;;  %v2660_v11 = vld [vmem:[%s4992_s1 + $0x248] sm:$0xff]  ;;  %vm2663_vm2 = vcmask 523264  }
 0x7be   : > { %v1962_v0 = vmax.f32 %v1938_v54, %v1953_v32  ;;  %v2384_v54 = vld [vmem:[%s4992_s1 + $0x1c8] sm:$0xff]  ;;  %v2466_v58 = vld [vmem:[%s4992_s1 + $0x1f0] sm:$0xff] }
 0x7bf   : > { %v1982_v9 = vmax.f32 %v1963_v5, %v1971_v61  ;;  %v3503_v55 = vpack.c.bf16 %v2385_v15, %v2384_v54  ;;  %v3509_v59 = vpack.c.bf16 %v2466_v58, %v2465_v57  ;;  %v3512_v61 = vpack.c.bf16 %v2544_v60, %v2543_v49  ;;  %v2546_v32 = vld [vmem:[%s4992_s1 + $0x210] sm:$0xff] }
 0x7c0   : > { %v1981_v3 = vmax.f32 %v1962_v0, %v1972_v63  ;;  %v2655_v0 = vld [vmem:[%s4992_s1 + $0x220] sm:$0xff] }
 0x7c2   : > { %v3471_v6 = vpack.c.bf16 %v1981_v3, %v1980_v62  ;;  %v2545_v62 = vld [vmem:[%s4992_s1 + $0x208] sm:$0xff] }
 0x7c3   : > { %v3515_v63 = vpack.c.bf16 %v2546_v32, %v2545_v62  ;;  %v2656_v3 = vld [vmem:[%s4992_s1 + $0x228] sm:$0xff] }
 0x7c4   : > { %3472 = vmatprep.subr.bf16.mxu0 %v3471_v6  ;;  %v3518_v5 = vpack.c.bf16 %v2656_v3, %v2655_v0 }
 0x7c5   : > { %3474 = vmatpush3.bf16.msra.mxu0 %v3471_v6  ;;  %v2657_v6 = vld [vmem:[%s4992_s1 + $0x230] sm:$0xff] }
 0x7c6   : > { %3203 = vmatprep.subr.msk.mxu0 %vm1992_vm15, %v1982_v9 }
 0x7c9   : > { %3204 = vmatpush3.msk.msra.mxu0 %vm1992_vm15, %v1982_v9 }
 0x7ca   : > { %3206 = vmatmul.mubr.msk.f32.vlgmr.msra.gmra.mrb[2].mxu0 %vm1985_vm8, %v1984_v8  ;;  %3475 = vmatprep.subr.bf16.mxu0 %v3816_v2  ;;  %v3524_v8 = vpack.c.bf16 %v2660_v11, %v2659_v23 }
 0x7cb   : > { %3477 = vmatpush3.bf16.msra.mxu0 %v3476_v12  ;;  %3216 = vmatprep.mubr.msk.f32.mxu0 %vm3817_vm1, %v3818_v56  ;;  %v2661_v12 = vld [vmem:[%s4992_s1 + $0x250] sm:$0xff] }
 0x7cc   : > { %3478 = vmatprep.subr.bf16.mxu0 %v3816_v2  ;;  %v3527_v10 = vpack.c.bf16 %v2662_v4, %v2661_v12 }
 0x7cf   : > { %3480 = vmatpush3.bf16.msra.mxu0 %v3479_v13  ;;  %v2876_v13 = vld [vmem:[%s4992_s1 + $0x218] ss:$0 sm:$0xff] }
 0x7d0   : > { %3481 = vmatprep.subr.bf16.mxu0 %v3816_v2 }
 0x89d   : > { %v3207_v18 = vpop.f32.mrb[2].mxu0 }
 0x89e   : > { %v2388_v25 = vrot.slane %v3207_v18, 4  ;;  %v2468_v26 = vrot.slane %v3207_v18, 5  ;;  %v2548_v27 = vrot.slane %v3207_v18, 6  ;;  %v2062_v28 = vpop.f32.mrb[3].mxu0 }
 0x89f   : > { %v2080_v31 = vrot.slane %v2062_v28, 1  ;;  %v2387_v20 = vrot.slane %v2062_v28, 4  ;;  %v2467_v38 = vrot.slane %v2062_v28, 5  ;;  %v2547_v39 = vrot.slane %v2062_v28, 6 }
 0x8a0   : > { %v2230_v22 = vrot.slane %v2062_v28, 2  ;;  %v2308_v53 = vrot.slane %v2062_v28, 3 }
 0x8a1   : > { %3217 = vmatmul.mubr.msk.f32.vlgmr.msra.gmra.mrb[4].mxu0 %vm2081_vm0, %v2080_v31  ;;  %v2389_v42 = vsel %vm1509_vm4, %v2387_v20, %v2388_v25  ;;  %v2469_v44 = vsel %vm942_vm12, %v2467_v38, %v2468_v26  ;;  %v4818_v33 = vsel %vm1743_vm5, %v2547_v39, %v2548_v27  ;;  %vm2647_vm12 = vcmask 518144  }
 0x8a2   : > { %3483 = vmatpush3.bf16.msra.mxu0 %v3482_v29  ;;  %3227 = vmatprep.mubr.msk.f32.mxu0 %vm3817_vm1, %v3818_v56 }
 0x8a3   : > { %3484 = vmatprep.subr.bf16.mxu0 %v3816_v2 }
 0x8a6   : > { %3486 = vmatpush3.bf16.msra.mxu0 %v3485_v43 }
 0x8a7   : > { %3487 = vmatprep.subr.bf16.mxu0 %v3816_v2 }
 0x8a9   : > { %3228 = vmatmul.mubr.msk.f32.vlgmr.msra.gmra.mrb[4].mxu0 %vm2081_vm0, %v2062_v28 }
 0x8aa   : > { %3489 = vmatpush3.bf16.msra.mxu0 %v3488_v35  ;;  %3238 = vmatprep.mubr.msk.f32.mxu0 %vm3817_vm1, %v3818_v56 }
 0x8ab   : > { %3490 = vmatprep.subr.bf16.mxu0 %v3816_v2 }
 0x8ae   : > { %3492 = vmatpush3.bf16.msra.mxu0 %v3491_v45 }
 0x8af   : > { %3493 = vmatprep.subr.bf16.mxu0 %v3816_v2 }
 0x8b1   : > { %3239 = vmatmul.mubr.msk.f32.vlgmr.msra.gmra.mrb[4].mxu0 %vm2081_vm0, %v2230_v22 }
 0x8b2   : > { %3495 = vmatpush3.bf16.msra.mxu0 %v3494_v7  ;;  %3249 = vmatprep.mubr.msk.f32.mxu0 %vm3817_vm1, %v3818_v56 }
 0x8b3   : > { %3496 = vmatprep.subr.bf16.mxu0 %v3816_v2 }
 0x8b6   : > { %3498 = vmatpush3.bf16.msra.mxu0 %v3497_v21 }
 0x8b7   : > { %3499 = vmatprep.subr.bf16.mxu0 %v3816_v2 }
 0x8b9   : > { %3250 = vmatmul.mubr.msk.f32.vlgmr.msra.gmra.mrb[4].mxu0 %vm2081_vm0, %v2308_v53 }
 0x8ba   : > { %3501 = vmatpush3.bf16.msra.mxu0 %v3500_v52  ;;  %3260 = vmatprep.mubr.msk.f32.mxu0 %vm3817_vm1, %v3818_v56 }
 0x8bb   : > { %3502 = vmatprep.subr.bf16.mxu0 %v3816_v2 }
 0x8be   : > { %3504 = vmatpush3.bf16.msra.mxu0 %v3503_v55 }
 0x8bf   : > { %3505 = vmatprep.subr.bf16.mxu0 %v3816_v2 }
 0x8c1   : > { %3261 = vmatmul.mubr.msk.f32.vlgmr.msra.gmra.mrb[4].mxu0 %vm2081_vm0, %v2389_v42 }
 0x8c2   : > { %3507 = vmatpush3.bf16.msra.mxu0 %v3506_v1  ;;  %3271 = vmatprep.mubr.msk.f32.mxu0 %vm3817_vm1, %v3818_v56 }
 0x8c3   : > { %3508 = vmatprep.subr.bf16.mxu0 %v3816_v2 }
 0x8c6   : > { %3510 = vmatpush3.bf16.msra.mxu0 %v3509_v59 }
 0x8c7   : > { %3511 = vmatprep.subr.bf16.mxu0 %v3816_v2 }
 0x8c9   : > { %3272 = vmatmul.mubr.msk.f32.vlgmr.msra.gmra.mrb[4].mxu0 %vm2081_vm0, %v2469_v44 }
 0x8ca   : > { %3513 = vmatpush3.bf16.msra.mxu0 %v3512_v61  ;;  %3282 = vmatprep.mubr.msk.f32.mxu0 %vm3817_vm1, %v3818_v56 }
 0x8cb   : > { %3514 = vmatprep.subr.bf16.mxu0 %v3816_v2 }
 0x8ce   : > { %3516 = vmatpush3.bf16.msra.mxu0 %v3515_v63 }
 0x8cf   : > { %3517 = vmatprep.subr.bf16.mxu0 %v3816_v2 }
 0x8d1   : > { %3283 = vmatmul.mubr.msk.f32.vlgmr.msra.gmra.mrb[4].mxu0 %vm2081_vm0, %v4818_v33 }
 0x8d2   : > { %3301 = vmatprep.mubr.msk.f32.mxu0 %vm3817_vm1, %v3818_v56  ;;  %3519 = vmatpush3.bf16.msra.mxu0 %v3518_v5  ;;  %v2658_v56 = vld [vmem:[%s4992_s1 + $0x238] sm:$0xff] }
 0x8d3   : > { %3520 = vmatprep.subr.bf16.mxu0 %v3816_v2  ;;  %v3521_v9 = vpack.c.bf16 %v2658_v56, %v2657_v6 }
 0x8d6   : > { %3522 = vmatpush3.bf16.msra.mxu0 %v3521_v9 }
 0x8d7   : > { %3523 = vmatprep.subr.bf16.mxu0 %v3816_v2 }
 0x8da   : > { %3525 = vmatpush3.bf16.msra.mxu0 %v3524_v8 }
 0x8db   : > { %3526 = vmatprep.subr.bf16.mxu0 %v3816_v2 }
 0x8de   : > { %3528 = vmatpush3.bf16.msra.mxu0 %v3527_v10 }
 0x9a4   : > { %v2618_v16 = vpop.f32.mrb[4].mxu0 }
 0x9a5   : > { %v2629_v18 = vmul.f32 %v2876_v13, %v2618_v16  ;;  %v3284_v25 = vpop.f32.mrb[5].mxu0 }
 0x9a7   : > { %v2634_v26 = vadd.f32 %v2877_v17, %v2629_v18 }
 0x9a9   : > { %v2635_v27 = vmin.f32 %v2634_v26, 20.0  ;;  %vm2644_vm1 = vcmp.gt.f32.partialorder %v2634_v26, 20.0 }
 0x9ab   : > { %v2636_v28 = vmul.f32 1.442695, %v2635_v27 }
 0x9ad   : > { %3734 = vpow2.f32 %v2636_v28 }
 0x9b7   : > { %v3735_v29 = vpop.eup %3734 }
 0x9b8   : > { %v2638_v31 = vadd.f32 1.0, %v3735_v29 }
 0x9ba   : > { %v2639_v34 = vmul.f32 %v2638_v31, %v2638_v31 }
 0x9bc   : > { %v2641_v2 = vadd.f32 1.0, %v2639_v34  ;;  %v2878_v36 = vadd.f32 -1.0, %v2639_v34 }
 0x9be   : > { %3736 = vrcp.f32 %v2641_v2 }
 0x9c8   : > { %v3737_v20 = vpop.eup %3736 }
 0x9c9   : > { %v2643_v38 = vmul.f32 %v3737_v20, %v2878_v36 }
 0x9cb   : > { %v2645_v39 = vmul.f32 %v2643_v38, %v2634_v26 }
 0x9cd   : > { %v2646_v42 = vsel %vm2644_vm1, %v2634_v26, %v2645_v39 }
 0x9ce   : > { %v2648_v43 = vsel %vm2647_vm12, %v2646_v42, -inf }
 0x9cf   : > { %v2649_v44 = vrot.slane %v2648_v43, 4 }
 0x9d1   : > { %v2650_v33 = vmax.f32 %v2648_v43, %v2649_v44 }
 0x9d3   : > { %v2651_v30 = vrot.slane %v2650_v33, 2 }
 0x9d5   : > { %v2652_v41 = vmax.f32 %v2650_v33, %v2651_v30 }
 0x9d7   : > { %v2653_v35 = vrot.slane %v2652_v41, 1 }
 0x9d9   : > { %v2654_v19 = vmax.f32 %v2652_v41, %v2653_v35 }
 0x9db   : > { %3302 = vmatmul.mubr.msk.f32.vlgmr.msra.gmra.mrb[6].mxu0 %vm2663_vm2, %v2654_v19 }
 0xaae   : > { %v2733_v24 = vpop.f32.mrb[6].mxu0 }
 0xaaf   : > { %2738 = vst.msk [vmem:[%s160_s17] sm:$0x1] %vm2737_vm3, %v2733_v24  ;;  %v3303_v45 = vpop.f32.mrb[7].mxu0 }
 0xab0   : > { %3751 = shalt.err (!%p3748_p3)
}
 0xab1   : > { %s3752_s9 = scalar_lea.hbm %s4949_s25, 16  ;;  %s3756_s29 = scalar_lea.hbm %s4994_s3, 32 }
 0xab2   : > { %p3753_p4 = scmp.ne.s32.totalorder %s4949_s25, %s3752_s9  ;;  %p3757_p9 = scmp.lt.u32.totalorder %s4949_s25, %s4994_s3 }
 0xab3   : > { %p3758_p10 = scmp.lt.u32.totalorder %s3756_s29, %s3752_s9  ;;  %p3760_p12 = scmp.lt.u32.totalorder %s3752_s9, %s4949_s25 }
 0xab4   : > { %p3754_p7 = pnand %p3753_p4, %p3878_p5 }
 0xab5   : > { %p3759_p11 = por %p3758_p10, %p3757_p9 }
 0xab6   : > { %p3755_p8 = pneg %p3754_p7 }
 0xab7   : > { %p3761_p13 = por %p3760_p12, %p3759_p11 }
 0xab9   : > { %p3762_p0 = pnand %p3761_p13, %p3755_p8 }
 0xabb   : > { %3765 = shalt.err (!%p3762_p0)
}
 0xabc   : > { %3603 = dma.vmem_to_hbm [thread:$0]  (%p3878_p5), %s4951_s19, 16, %s4949_s25, %s2740_s26  }
 0xabd PF: > { %p3609_p1 = scmp.ge.s32.totalorder %s3800_s15, 2  ;;  %s2764_s7 = sand.u32 1, %s3788_s12  }
 0xabe   : > { %s2765_s4 = scalar_lea.sflag [#allocation3], %s2764_s7 }
 0xabf   : > { %p3606_p2 = pnand %p3609_p1, %p3882_p6 }
 0xac1   : > { %3783 = dma.done.wait (!%p3606_p2), %s2765_s4, 16  }
 0xac2   : > { %3785 = vsyncadd (!%p3606_p2), %s2765_s4, 4294967280  ;;  %p13_p3 = scmp.ge.s32.totalorder %s3865_s18, 4   ;;  %s4997_s12 = smov %s3792_s13 }
 0xac3   : > { %s4998_s13 = smov %s3796_s14  ;;  %s4999_s14 = smov %s3876_s21 }
 0xac4   : > { %s5000_s15 = smov %s3865_s18  ;;  %15 = sbr.rel (!%p13_p3) target bundleno = 3 (0x3), region = 67 }
 0xacb   :  { %2769 = vsyncpa [#allocation3], 1 }
 0xacc   :  { %2771 = vsyncpa [#allocation3 + $0x1], 1 }

</bundles_post_ra>
